<compile_context>
chip_gen: v6e
topology: v6e:2x2x1
jax: 0.10.0
libtpu: 0.0.40
codegen_flags: <defaults>
</compile_context>

<pallas_src>
import functools

import jax
import jax.numpy as jnp
from jax import lax
from jax.experimental import pallas as pl
from jax.experimental.pallas import tpu as pltpu

_LANE = 128
_SUBLANE = 8


def _gru_kernel(x_ref, wih_ref, whh_ref, bi_ref, bhn_ref,
                y_ref, hn_ref, gi_scratch, *, T, Bb, Hp):
    """One grid step == one GRU layer over the full sequence for one batch chunk.

    x_ref:      (T, Bb, Hp)     bf16 padded input chunk (read only at layer 0)
    wih_ref:    (1, Hp, 3*Hp)   bf16 input->gates weights (gate-major columns)
    whh_ref:    (1, Hp, 3*Hp)   bf16 hidden->gates weights
    bi_ref:     (1, 1, 3*Hp)    f32 biases [b_ir+b_hr, b_iz+b_hz, b_in]
    bhn_ref:    (1, 1, Hp)      f32 hidden bias of the n gate (kept separate)
    y_ref:      (T, Bb, Hp)     bf16 resident layer output == next layer's input
    hn_ref:     (1, Bb, Hp)     f32 final hidden state of this layer / chunk
    gi_scratch: (T, Bb, 3*Hp)   bf16 bias-free input->gates for all timesteps
    """
    layer = pl.program_id(1)

    w_ih = wih_ref[0]                                     # (Hp, 3Hp) bf16
    w_hh = whh_ref[0]                                     # (Hp, 3Hp) bf16
    bi = bi_ref[0]                                        # (1, 3Hp)  f32
    b_hn = bhn_ref[0]                                     # (1, Hp)   f32

    # ---- Phase 1: input->gates GEMM for ALL timesteps in one MXU pass -------
    # Layer 0 reads the (eval-mode dropout == identity) input; deeper layers
    # read the previous layer's output already resident in y_ref (no copy).
    # TODO(synk): training-mode input_dropout_p / inter-layer dropout_p not applied.
    def input_gates(src_ref):
        xin = src_ref[...].reshape(T * Bb, Hp)            # bf16
        gi = jnp.dot(xin, w_ih, preferred_element_type=jnp.float32)
        gi_scratch[...] = gi.astype(jnp.bfloat16).reshape(T, Bb, 3 * Hp)

    @pl.when(layer == 0)
    def _():
        input_gates(x_ref)

    @pl.when(layer != 0)
    def _():
        input_gates(y_ref)

    # ---- Phase 2: sequential recurrence (one hidden->gates matmul / step) ---
    def gates(gi_t, gh, h_prev):
        g = gi_t.astype(jnp.float32) + bi                 # bias add in f32
        # PyTorch gate order r, z, n; 128-lane-aligned slices are free views.
        r = jax.nn.sigmoid(g[:, :Hp] + gh[:, :Hp])
        z = jax.nn.sigmoid(g[:, Hp:2 * Hp] + gh[:, Hp:2 * Hp])
        n = jnp.tanh(g[:, 2 * Hp:] + r * (gh[:, 2 * Hp:] + b_hn))
        return (1.0 - z) * n + z * h_prev

    # t == 0 peeled: h_prev == 0 so gh == 0 and the matmul is skipped
    # (removes 1/T of the serial MXU work on the critical path).
    zero_g = jnp.zeros((Bb, 3 * Hp), jnp.float32)
    zero_h = jnp.zeros((Bb, Hp), jnp.float32)
    h0 = gates(gi_scratch[0], zero_g, zero_h)
    y_ref[0] = h0.astype(y_ref.dtype)

    def step(t, h_prev):                                  # h_prev: (Bb, Hp) f32
        gh = jnp.dot(h_prev.astype(jnp.bfloat16), w_hh,
                     preferred_element_type=jnp.float32)  # (Bb, 3Hp) f32
        h_new = gates(gi_scratch[t], gh, h_prev)
        y_ref[t] = h_new.astype(y_ref.dtype)
        return h_new

    # Bounded unroll: keeps LLO scheduling visibility without blowing the
    # 64-vreg file at large T.
    h_last = lax.fori_loop(1, T, step, h0, unroll=max(1, min(T - 1, 8)))
    hn_ref[0] = h_last


def gru_forward_pallas(x, w_ih, w_hh, b_ih, b_hh, *, b_block=None):
    """x: (T, B, H); weights in PyTorch layout (L, 3H, H) / (L, 3H).

    Returns (output, h_n) matching nn.GRU semantics (h_0 = zeros, eval mode).
    TODO(synk): layer-0 input feature size is assumed == hidden_size (as in the
    test harness); a differing embedding dim would need a separate layer-0 W_ih.
    """
    T, B, H = x.shape
    L = w_ih.shape[0]
    Hp = _LANE * pl.cdiv(H, _LANE)        # lane-aligned hidden size

    # Batch chunking: sublane-aligned chunks; the chunk axis is the "parallel"
    # grid axis (useful on v7x's two TensorCores when B is large).
    if b_block is None:
        b_block = B if B <= 256 else 256
    Bb = _SUBLANE * pl.cdiv(max(b_block, 1), _SUBLANE)
    nb = pl.cdiv(B, Bb)
    Bp = nb * Bb

    f32 = jnp.float32
    bf16 = jnp.bfloat16

    # Padded, time-major, bf16 input (padded rows/cols are zero and stay zero).
    x_p = jnp.zeros((T, Bp, Hp), bf16).at[:, :B, :H].set(x.astype(bf16))

    # Weights: PyTorch (L, 3H, H) -> per-gate padded -> (L, Hp, 3*Hp) so the
    # kernel does (rows, Hp) @ (Hp, 3*Hp) with gate-major, lane-aligned columns.
    w_ih_g = w_ih.reshape(L, 3, H, H)
    w_hh_g = w_hh.reshape(L, 3, H, H)
    wi = jnp.zeros((L, 3, Hp, Hp), f32).at[:, :, :H, :H].set(w_ih_g)
    wh = jnp.zeros((L, 3, Hp, Hp), f32).at[:, :, :H, :H].set(w_hh_g)
    wi_t = jnp.transpose(wi, (0, 3, 1, 2)).reshape(L, Hp, 3 * Hp).astype(bf16)
    wh_t = jnp.transpose(wh, (0, 3, 1, 2)).reshape(L, Hp, 3 * Hp).astype(bf16)

    # Biases: fold b_hh into b_ih for the r/z gates; keep b_hn separate
    # (PyTorch n gate needs r * (W_hn h + b_hn)).
    bi_g = b_ih.reshape(L, 3, H)
    bh_g = b_hh.reshape(L, 3, H)
    bi_fold = jnp.stack(
        [bi_g[:, 0] + bh_g[:, 0], bi_g[:, 1] + bh_g[:, 1], bi_g[:, 2]], axis=1)
    bi_p = jnp.zeros((L, 3, Hp), f32).at[:, :, :H].set(bi_fold).reshape(L, 1, 3 * Hp)
    bhn_p = jnp.zeros((L, 1, Hp), f32).at[:, 0, :H].set(bh_g[:, 2])

    kernel = functools.partial(_gru_kernel, T=T, Bb=Bb, Hp=Hp)

    # VMEM budget: resident bf16 activations (x, y), bf16 gi scratch,
    # double-buffered bf16 weights, small outputs/biases.
    est = (2 * 2 * (T * Bb * Hp * 2)            # x + y blocks (2 buffers each)
           + T * Bb * 3 * Hp * 2                # gi scratch
           + 2 * 2 * (Hp * 3 * Hp * 2)          # w_ih + w_hh (2 buffers each)
           + 2 * (Bb * Hp * 4)                  # h_n block
           + 4 * (4 * Hp) * 4)                  # biases
    cap = 48 * 1024 * 1024                      # safe on v7x's 64 MiB VMEM
    try:                                        # raise cap on 128-MiB chips
        cap = int(pltpu.get_tpu_info().vmem_capacity_bytes * 3 // 4)
    except Exception:
        pass
    vmem_limit = int(min(max(2 * est, 32 * 1024 * 1024), cap))

    grid_spec = pltpu.PrefetchScalarGridSpec(
        num_scalar_prefetch=0,
        grid=(nb, L),   # layer axis last -> y block resident across layers
        in_specs=[
            pl.BlockSpec((T, Bb, Hp), lambda b, l: (0, b, 0)),      # x chunk
            pl.BlockSpec((1, Hp, 3 * Hp), lambda b, l: (l, 0, 0)),  # w_ih[l]
            pl.BlockSpec((1, Hp, 3 * Hp), lambda b, l: (l, 0, 0)),  # w_hh[l]
            pl.BlockSpec((1, 1, 3 * Hp), lambda b, l: (l, 0, 0)),   # folded biases
            pl.BlockSpec((1, 1, Hp), lambda b, l: (l, 0, 0)),       # b_hn
        ],
        out_specs=[
            pl.BlockSpec((T, Bb, Hp), lambda b, l: (0, b, 0)),      # y (resident)
            pl.BlockSpec((1, Bb, Hp), lambda b, l: (l, b, 0)),      # h_n[l]
        ],
        scratch_shapes=[pltpu.VMEM((T, Bb, 3 * Hp), jnp.bfloat16)],
    )

    y_p, hn_p = pl.pallas_call(
        kernel,
        out_shape=(
            jax.ShapeDtypeStruct((T, Bp, Hp), bf16),
            jax.ShapeDtypeStruct((L, Bp, Hp), f32),
        ),
        grid_spec=grid_spec,
        compiler_params=pltpu.CompilerParams(
            # Layer axis is a true recurrence (resident y block) -> arbitrary;
            # batch-chunk axis is independent -> parallel (v7x megacore).
            dimension_semantics=("parallel", "arbitrary"),
            vmem_limit_bytes=vmem_limit,
        ),
    )(x_p, wi_t, wh_t, bi_p, bhn_p)

    return y_p[:, :B, :H].astype(x.dtype), hn_p[:, :B, :H].astype(x.dtype)


def gru_forward_ref(x, w_ih, w_hh, b_ih, b_hh):
    """Pure-f32 JAX reference (lax.scan), same semantics as nn.GRU, h_0 = 0."""
    T, B, H = x.shape
    L = w_ih.shape[0]

    def step(h_all, x_t):
        layer_in = x_t
        new_h = []
        for l in range(L):
            h_prev = h_all[l]
            gi = layer_in @ w_ih[l].T + b_ih[l]
            gh = h_prev @ w_hh[l].T + b_hh[l]
            i_r, i_z, i_n = jnp.split(gi, 3, axis=-1)
            h_r, h_z, h_n = jnp.split(gh, 3, axis=-1)
            r = jax.nn.sigmoid(i_r + h_r)
            z = jax.nn.sigmoid(i_z + h_z)
            n = jnp.tanh(i_n + r * h_n)
            h_new = (1.0 - z) * n + z * h_prev
            new_h.append(h_new)
            layer_in = h_new
        return jnp.stack(new_h), layer_in

    h0 = jnp.zeros((L, B, H), jnp.float32)
    h_n, ys = lax.scan(step, h0, x)
    return ys, h_n


if __name__ == "__main__":
    # BaseRNN config.  NOTE: at this toy shape (T=8, B=2, H=32) padding to the
    # (8, 128) vreg tile makes >90% of the matmul FLOPs padding and the kernel
    # is invocation/latency bound — size any perf expectations from real
    # BaseRNN shapes, not this correctness harness.
    vocab_size = 64
    max_len = 8
    hidden_size = 32
    n_layers = 2
    input_dropout_p = 0.0     # eval mode -> identity
    dropout_p = 0.0
    rnn_cell = "gru"
    if rnn_cell.lower() == "lstm":
        # TODO(synk): LSTM cell path not implemented; only the GRU stack is.
        raise NotImplementedError("LSTM path not implemented in this kernel")
    elif rnn_cell.lower() != "gru":
        raise ValueError("Unsupported RNN Cell: {0}".format(rnn_cell))

    T, B, H, L = max_len, 2, hidden_size, n_layers

    key = jax.random.PRNGKey(0)
    k_x, k_wi, k_wh, k_bi, k_bh = jax.random.split(key, 5)
    bound = 1.0 / jnp.sqrt(H)
    x = jax.random.normal(k_x, (T, B, H), dtype=jnp.float32)
    # layer-0 input size == hidden_size so all layer weights stack uniformly
    w_ih = jax.random.uniform(k_wi, (L, 3 * H, H), jnp.float32, -bound, bound)
    w_hh = jax.random.uniform(k_wh, (L, 3 * H, H), jnp.float32, -bound, bound)
    b_ih = jax.random.uniform(k_bi, (L, 3 * H), jnp.float32, -bound, bound)
    b_hh = jax.random.uniform(k_bh, (L, 3 * H), jnp.float32, -bound, bound)

    out, h_n = gru_forward_pallas(x, w_ih, w_hh, b_ih, b_hh)
    out = jax.block_until_ready(out)
    h_n = jax.block_until_ready(h_n)

    out_ref, h_n_ref = gru_forward_ref(x, w_ih, w_hh, b_ih, b_hh)
    # Kernel keeps weights, activations and the gi scratch in bf16 (f32
    # accumulation / gate math); the reference is pure f32, so the tolerance
    # reflects accumulated bf16 rounding across layers and timesteps.
    assert jnp.allclose(out, out_ref, atol=1e-1, rtol=1e-1), \
        float(jnp.max(jnp.abs(out - out_ref)))
    assert jnp.allclose(h_n, h_n_ref, atol=1e-1, rtol=1e-1), \
        float(jnp.max(jnp.abs(h_n - h_n_ref)))

    print("KERNEL_OK")
</pallas_src>

<mosaic_0001>
module attributes {stable_mosaic.version = 11 : i64} {
  func.func @_gru_kernel(%arg0: i32, %arg1: i32, %arg2: memref<8x8x128xbf16, #tpu.memory_space<vmem>>, %arg3: memref<1x128x384xbf16, #tpu.memory_space<vmem>>, %arg4: memref<1x128x384xbf16, #tpu.memory_space<vmem>>, %arg5: memref<1x1x384xf32, #tpu.memory_space<vmem>>, %arg6: memref<1x1x128xf32, #tpu.memory_space<vmem>>, %arg7: memref<8x8x128xbf16, #tpu.memory_space<vmem>>, %arg8: memref<1x8x128xf32, #tpu.memory_space<vmem>>, %arg9: memref<8x8x384xbf16, #tpu.memory_space<vmem>>) attributes {dimension_semantics = [#tpu.dimension_semantics<parallel>, #tpu.dimension_semantics<arbitrary>], iteration_bounds = array<i64: 1, 2>, scalar_prefetch = 0 : i64, scratch_operands = 1 : i64, tpu.core_type = #tpu.core_type<tc>, window_params = [{transform_indices = @transform_0, window_bounds = array<i64: 8, 8, 128>}, {transform_indices = @transform_1, window_bounds = array<i64: 1, 128, 384>}, {transform_indices = @transform_2, window_bounds = array<i64: 1, 128, 384>}, {transform_indices = @transform_3, window_bounds = array<i64: 1, 1, 384>}, {transform_indices = @transform_4, window_bounds = array<i64: 1, 1, 128>}, {transform_indices = @transform_5, window_bounds = array<i64: 8, 8, 128>}, {transform_indices = @transform_6, window_bounds = array<i64: 1, 8, 128>}]} {
    %c0 = arith.constant 0 : index
    %c0_0 = arith.constant 0 : index
    %c0_1 = arith.constant 0 : index
    %0 = vector.load %arg3[%c0, %c0_0, %c0_1] : memref<1x128x384xbf16, #tpu.memory_space<vmem>>, vector<1x128x384xbf16>
    %1 = vector.shape_cast %0 : vector<1x128x384xbf16> to vector<128x384xbf16>
    %c0_2 = arith.constant 0 : index
    %c0_3 = arith.constant 0 : index
    %c0_4 = arith.constant 0 : index
    %2 = vector.load %arg4[%c0_2, %c0_3, %c0_4] : memref<1x128x384xbf16, #tpu.memory_space<vmem>>, vector<1x128x384xbf16>
    %3 = vector.shape_cast %2 : vector<1x128x384xbf16> to vector<128x384xbf16>
    %c0_5 = arith.constant 0 : index
    %c0_6 = arith.constant 0 : index
    %c0_7 = arith.constant 0 : index
    %4 = vector.load %arg5[%c0_5, %c0_6, %c0_7] : memref<1x1x384xf32, #tpu.memory_space<vmem>>, vector<1x1x384xf32>
    %5 = vector.shape_cast %4 : vector<1x1x384xf32> to vector<1x384xf32>
    %c0_8 = arith.constant 0 : index
    %c0_9 = arith.constant 0 : index
    %c0_10 = arith.constant 0 : index
    %6 = vector.load %arg6[%c0_8, %c0_9, %c0_10] : memref<1x1x128xf32, #tpu.memory_space<vmem>>, vector<1x1x128xf32>
    %7 = vector.shape_cast %6 : vector<1x1x128xf32> to vector<1x128xf32>
    %c0_i32 = arith.constant 0 : i32
    %8 = arith.cmpi eq, %arg1, %c0_i32 : i32
    %9 = arith.extui %8 : i1 to i32
    %c0_i32_11 = arith.constant 0 : i32
    %10 = arith.cmpi ne, %9, %c0_i32_11 : i32
    scf.if %10 {
      %c0_84 = arith.constant 0 : index
      %c0_85 = arith.constant 0 : index
      %c0_86 = arith.constant 0 : index
      %343 = vector.load %arg2[%c0_84, %c0_85, %c0_86] : memref<8x8x128xbf16, #tpu.memory_space<vmem>>, vector<8x8x128xbf16>
      %344 = vector.shape_cast %343 : vector<8x8x128xbf16> to vector<64x128xbf16>
      %cst_87 = arith.constant dense<0.000000e+00> : vector<64x384xf32>
      %345 = tpu.matmul %344, %1, %cst_87 {dimension_numbers = #tpu.dot_dimension_numbers<[1], [0], [0], [1], [0, 0, 1, 1], [], []>} : vector<64x128xbf16>, vector<128x384xbf16>, vector<64x384xf32> -> vector<64x384xf32>
      %346 = arith.truncf %345 : vector<64x384xf32> to vector<64x384xbf16>
      %347 = vector.shape_cast %346 : vector<64x384xbf16> to vector<8x8x384xbf16>
      %c0_88 = arith.constant 0 : index
      %c0_89 = arith.constant 0 : index
      %c0_90 = arith.constant 0 : index
      %348 = vector.load %arg9[%c0_88, %c0_89, %c0_90] : memref<8x8x384xbf16, #tpu.memory_space<vmem>>, vector<8x8x384xbf16>
      tpu.vector_store %arg9[%c0_88, %c0_89, %c0_90], %347 {strides = array<i32>} : memref<8x8x384xbf16, #tpu.memory_space<vmem>>, vector<8x8x384xbf16>,
    } else {
    }
    %c0_i32_12 = arith.constant 0 : i32
    %11 = arith.cmpi ne, %arg1, %c0_i32_12 : i32
    %12 = arith.extui %11 : i1 to i32
    %c0_i32_13 = arith.constant 0 : i32
    %13 = arith.cmpi ne, %12, %c0_i32_13 : i32
    scf.if %13 {
      %c0_84 = arith.constant 0 : index
      %c0_85 = arith.constant 0 : index
      %c0_86 = arith.constant 0 : index
      %343 = vector.load %arg7[%c0_84, %c0_85, %c0_86] : memref<8x8x128xbf16, #tpu.memory_space<vmem>>, vector<8x8x128xbf16>
      %344 = vector.shape_cast %343 : vector<8x8x128xbf16> to vector<64x128xbf16>
      %cst_87 = arith.constant dense<0.000000e+00> : vector<64x384xf32>
      %345 = tpu.matmul %344, %1, %cst_87 {dimension_numbers = #tpu.dot_dimension_numbers<[1], [0], [0], [1], [0, 0, 1, 1], [], []>} : vector<64x128xbf16>, vector<128x384xbf16>, vector<64x384xf32> -> vector<64x384xf32>
      %346 = arith.truncf %345 : vector<64x384xf32> to vector<64x384xbf16>
      %347 = vector.shape_cast %346 : vector<64x384xbf16> to vector<8x8x384xbf16>
      %c0_88 = arith.constant 0 : index
      %c0_89 = arith.constant 0 : index
      %c0_90 = arith.constant 0 : index
      %348 = vector.load %arg9[%c0_88, %c0_89, %c0_90] : memref<8x8x384xbf16, #tpu.memory_space<vmem>>, vector<8x8x384xbf16>
      tpu.vector_store %arg9[%c0_88, %c0_89, %c0_90], %347 {strides = array<i32>} : memref<8x8x384xbf16, #tpu.memory_space<vmem>>, vector<8x8x384xbf16>,
    } else {
    }
    %cst = arith.constant 0.000000e+00 : f32
    %14 = vector.broadcast %cst : f32 to vector<8x384xf32>
    %cst_14 = arith.constant 0.000000e+00 : f32
    %15 = vector.broadcast %cst_14 : f32 to vector<8x128xf32>
    %c0_15 = arith.constant 0 : index
    %c0_16 = arith.constant 0 : index
    %c0_17 = arith.constant 0 : index
    %16 = vector.load %arg9[%c0_15, %c0_16, %c0_17] : memref<8x8x384xbf16, #tpu.memory_space<vmem>>, vector<1x8x384xbf16>
    %17 = vector.shape_cast %16 : vector<1x8x384xbf16> to vector<8x384xbf16>
    %18 = arith.extf %17 : vector<8x384xbf16> to vector<8x384xf32>
    %19 = vector.broadcast %5 : vector<1x384xf32> to vector<8x384xf32>
    %20 = arith.addf %18, %19 : vector<8x384xf32>
    %21 = vector.extract_strided_slice %20 {offsets = [0, 0], sizes = [8, 128], strides = [1, 1]} : vector<8x384xf32> to vector<8x128xf32>
    %22 = vector.extract_strided_slice %14 {offsets = [0, 0], sizes = [8, 128], strides = [1, 1]} : vector<8x384xf32> to vector<8x128xf32>
    %23 = arith.addf %21, %22 : vector<8x128xf32>
    %24 = arith.negf %23 : vector<8x128xf32>
    %25 = math.exp %24 : vector<8x128xf32>
    %cst_18 = arith.constant 1.000000e+00 : f32
    %26 = vector.broadcast %cst_18 : f32 to vector<8x128xf32>
    %27 = arith.addf %26, %25 : vector<8x128xf32>
    %28 = arith.divf %26, %27 : vector<8x128xf32>
    %29 = vector.extract_strided_slice %20 {offsets = [0, 128], sizes = [8, 128], strides = [1, 1]} : vector<8x384xf32> to vector<8x128xf32>
    %30 = vector.extract_strided_slice %14 {offsets = [0, 128], sizes = [8, 128], strides = [1, 1]} : vector<8x384xf32> to vector<8x128xf32>
    %31 = arith.addf %29, %30 : vector<8x128xf32>
    %32 = arith.negf %31 : vector<8x128xf32>
    %33 = math.exp %32 : vector<8x128xf32>
    %cst_19 = arith.constant 1.000000e+00 : f32
    %34 = vector.broadcast %cst_19 : f32 to vector<8x128xf32>
    %35 = arith.addf %34, %33 : vector<8x128xf32>
    %36 = arith.divf %34, %35 : vector<8x128xf32>
    %37 = vector.extract_strided_slice %20 {offsets = [0, 256], sizes = [8, 128], strides = [1, 1]} : vector<8x384xf32> to vector<8x128xf32>
    %38 = vector.extract_strided_slice %14 {offsets = [0, 256], sizes = [8, 128], strides = [1, 1]} : vector<8x384xf32> to vector<8x128xf32>
    %39 = vector.broadcast %7 : vector<1x128xf32> to vector<8x128xf32>
    %40 = arith.addf %38, %39 : vector<8x128xf32>
    %41 = arith.mulf %28, %40 : vector<8x128xf32>
    %42 = arith.addf %37, %41 : vector<8x128xf32>
    %43 = math.tanh %42 : vector<8x128xf32>
    %cst_20 = arith.constant 1.000000e+00 : f32
    %44 = vector.broadcast %cst_20 : f32 to vector<8x128xf32>
    %45 = arith.subf %44, %36 : vector<8x128xf32>
    %46 = arith.mulf %45, %43 : vector<8x128xf32>
    %47 = arith.mulf %36, %15 : vector<8x128xf32>
    %48 = arith.addf %46, %47 : vector<8x128xf32>
    %49 = arith.truncf %48 : vector<8x128xf32> to vector<8x128xbf16>
    %c0_21 = arith.constant 0 : index
    %c0_22 = arith.constant 0 : index
    %c0_23 = arith.constant 0 : index
    %50 = vector.load %arg7[%c0_21, %c0_22, %c0_23] : memref<8x8x128xbf16, #tpu.memory_space<vmem>>, vector<1x8x128xbf16>
    %51 = vector.shape_cast %50 : vector<1x8x128xbf16> to vector<8x128xbf16>
    %52 = vector.shape_cast %49 : vector<8x128xbf16> to vector<1x8x128xbf16>
    tpu.vector_store %arg7[%c0_21, %c0_22, %c0_23], %52 {strides = array<i32>} : memref<8x8x128xbf16, #tpu.memory_space<vmem>>, vector<1x8x128xbf16>,
    %c1_i32 = arith.constant 1 : i32
    %53 = arith.truncf %48 : vector<8x128xf32> to vector<8x128xbf16>
    %cst_24 = arith.constant dense<0.000000e+00> : vector<8x384xf32>
    %54 = tpu.matmul %53, %3, %cst_24 {dimension_numbers = #tpu.dot_dimension_numbers<[1], [0], [0], [1], [0, 0, 1, 1], [], []>} : vector<8x128xbf16>, vector<128x384xbf16>, vector<8x384xf32> -> vector<8x384xf32>
    %55 = arith.index_cast %c1_i32 : i32 to index
    %c0_25 = arith.constant 0 : index
    %c0_26 = arith.constant 0 : index
    %56 = vector.load %arg9[%55, %c0_25, %c0_26] : memref<8x8x384xbf16, #tpu.memory_space<vmem>>, vector<1x8x384xbf16>
    %57 = vector.shape_cast %56 : vector<1x8x384xbf16> to vector<8x384xbf16>
    %58 = arith.extf %57 : vector<8x384xbf16> to vector<8x384xf32>
    %59 = vector.broadcast %5 : vector<1x384xf32> to vector<8x384xf32>
    %60 = arith.addf %58, %59 : vector<8x384xf32>
    %61 = vector.extract_strided_slice %60 {offsets = [0, 0], sizes = [8, 128], strides = [1, 1]} : vector<8x384xf32> to vector<8x128xf32>
    %62 = vector.extract_strided_slice %54 {offsets = [0, 0], sizes = [8, 128], strides = [1, 1]} : vector<8x384xf32> to vector<8x128xf32>
    %63 = arith.addf %61, %62 : vector<8x128xf32>
    %64 = arith.negf %63 : vector<8x128xf32>
    %65 = math.exp %64 : vector<8x128xf32>
    %cst_27 = arith.constant 1.000000e+00 : f32
    %66 = vector.broadcast %cst_27 : f32 to vector<8x128xf32>
    %67 = arith.addf %66, %65 : vector<8x128xf32>
    %68 = arith.divf %66, %67 : vector<8x128xf32>
    %69 = vector.extract_strided_slice %60 {offsets = [0, 128], sizes = [8, 128], strides = [1, 1]} : vector<8x384xf32> to vector<8x128xf32>
    %70 = vector.extract_strided_slice %54 {offsets = [0, 128], sizes = [8, 128], strides = [1, 1]} : vector<8x384xf32> to vector<8x128xf32>
    %71 = arith.addf %69, %70 : vector<8x128xf32>
    %72 = arith.negf %71 : vector<8x128xf32>
    %73 = math.exp %72 : vector<8x128xf32>
    %cst_28 = arith.constant 1.000000e+00 : f32
    %74 = vector.broadcast %cst_28 : f32 to vector<8x128xf32>
    %75 = arith.addf %74, %73 : vector<8x128xf32>
    %76 = arith.divf %74, %75 : vector<8x128xf32>
    %77 = vector.extract_strided_slice %60 {offsets = [0, 256], sizes = [8, 128], strides = [1, 1]} : vector<8x384xf32> to vector<8x128xf32>
    %78 = vector.extract_strided_slice %54 {offsets = [0, 256], sizes = [8, 128], strides = [1, 1]} : vector<8x384xf32> to vector<8x128xf32>
    %79 = vector.broadcast %7 : vector<1x128xf32> to vector<8x128xf32>
    %80 = arith.addf %78, %79 : vector<8x128xf32>
    %81 = arith.mulf %68, %80 : vector<8x128xf32>
    %82 = arith.addf %77, %81 : vector<8x128xf32>
    %83 = math.tanh %82 : vector<8x128xf32>
    %cst_29 = arith.constant 1.000000e+00 : f32
    %84 = vector.broadcast %cst_29 : f32 to vector<8x128xf32>
    %85 = arith.subf %84, %76 : vector<8x128xf32>
    %86 = arith.mulf %85, %83 : vector<8x128xf32>
    %87 = arith.mulf %76, %48 : vector<8x128xf32>
    %88 = arith.addf %86, %87 : vector<8x128xf32>
    %89 = arith.truncf %88 : vector<8x128xf32> to vector<8x128xbf16>
    %90 = arith.index_cast %c1_i32 : i32 to index
    %c0_30 = arith.constant 0 : index
    %c0_31 = arith.constant 0 : index
    %91 = vector.load %arg7[%90, %c0_30, %c0_31] : memref<8x8x128xbf16, #tpu.memory_space<vmem>>, vector<1x8x128xbf16>
    %92 = vector.shape_cast %91 : vector<1x8x128xbf16> to vector<8x128xbf16>
    %93 = vector.shape_cast %89 : vector<8x128xbf16> to vector<1x8x128xbf16>
    tpu.vector_store %arg7[%90, %c0_30, %c0_31], %93 {strides = array<i32>} : memref<8x8x128xbf16, #tpu.memory_space<vmem>>, vector<1x8x128xbf16>,
    %c2_i32 = arith.constant 2 : i32
    %94 = arith.truncf %88 : vector<8x128xf32> to vector<8x128xbf16>
    %cst_32 = arith.constant dense<0.000000e+00> : vector<8x384xf32>
    %95 = tpu.matmul %94, %3, %cst_32 {dimension_numbers = #tpu.dot_dimension_numbers<[1], [0], [0], [1], [0, 0, 1, 1], [], []>} : vector<8x128xbf16>, vector<128x384xbf16>, vector<8x384xf32> -> vector<8x384xf32>
    %96 = arith.index_cast %c2_i32 : i32 to index
    %c0_33 = arith.constant 0 : index
    %c0_34 = arith.constant 0 : index
    %97 = vector.load %arg9[%96, %c0_33, %c0_34] : memref<8x8x384xbf16, #tpu.memory_space<vmem>>, vector<1x8x384xbf16>
    %98 = vector.shape_cast %97 : vector<1x8x384xbf16> to vector<8x384xbf16>
    %99 = arith.extf %98 : vector<8x384xbf16> to vector<8x384xf32>
    %100 = vector.broadcast %5 : vector<1x384xf32> to vector<8x384xf32>
    %101 = arith.addf %99, %100 : vector<8x384xf32>
    %102 = vector.extract_strided_slice %101 {offsets = [0, 0], sizes = [8, 128], strides = [1, 1]} : vector<8x384xf32> to vector<8x128xf32>
    %103 = vector.extract_strided_slice %95 {offsets = [0, 0], sizes = [8, 128], strides = [1, 1]} : vector<8x384xf32> to vector<8x128xf32>
    %104 = arith.addf %102, %103 : vector<8x128xf32>
    %105 = arith.negf %104 : vector<8x128xf32>
    %106 = math.exp %105 : vector<8x128xf32>
    %cst_35 = arith.constant 1.000000e+00 : f32
    %107 = vector.broadcast %cst_35 : f32 to vector<8x128xf32>
    %108 = arith.addf %107, %106 : vector<8x128xf32>
    %109 = arith.divf %107, %108 : vector<8x128xf32>
    %110 = vector.extract_strided_slice %101 {offsets = [0, 128], sizes = [8, 128], strides = [1, 1]} : vector<8x384xf32> to vector<8x128xf32>
    %111 = vector.extract_strided_slice %95 {offsets = [0, 128], sizes = [8, 128], strides = [1, 1]} : vector<8x384xf32> to vector<8x128xf32>
    %112 = arith.addf %110, %111 : vector<8x128xf32>
    %113 = arith.negf %112 : vector<8x128xf32>
    %114 = math.exp %113 : vector<8x128xf32>
    %cst_36 = arith.constant 1.000000e+00 : f32
    %115 = vector.broadcast %cst_36 : f32 to vector<8x128xf32>
    %116 = arith.addf %115, %114 : vector<8x128xf32>
    %117 = arith.divf %115, %116 : vector<8x128xf32>
    %118 = vector.extract_strided_slice %101 {offsets = [0, 256], sizes = [8, 128], strides = [1, 1]} : vector<8x384xf32> to vector<8x128xf32>
    %119 = vector.extract_strided_slice %95 {offsets = [0, 256], sizes = [8, 128], strides = [1, 1]} : vector<8x384xf32> to vector<8x128xf32>
    %120 = vector.broadcast %7 : vector<1x128xf32> to vector<8x128xf32>
    %121 = arith.addf %119, %120 : vector<8x128xf32>
    %122 = arith.mulf %109, %121 : vector<8x128xf32>
    %123 = arith.addf %118, %122 : vector<8x128xf32>
    %124 = math.tanh %123 : vector<8x128xf32>
    %cst_37 = arith.constant 1.000000e+00 : f32
    %125 = vector.broadcast %cst_37 : f32 to vector<8x128xf32>
    %126 = arith.subf %125, %117 : vector<8x128xf32>
    %127 = arith.mulf %126, %124 : vector<8x128xf32>
    %128 = arith.mulf %117, %88 : vector<8x128xf32>
    %129 = arith.addf %127, %128 : vector<8x128xf32>
    %130 = arith.truncf %129 : vector<8x128xf32> to vector<8x128xbf16>
    %131 = arith.index_cast %c2_i32 : i32 to index
    %c0_38 = arith.constant 0 : index
    %c0_39 = arith.constant 0 : index
    %132 = vector.load %arg7[%131, %c0_38, %c0_39] : memref<8x8x128xbf16, #tpu.memory_space<vmem>>, vector<1x8x128xbf16>
    %133 = vector.shape_cast %132 : vector<1x8x128xbf16> to vector<8x128xbf16>
    %134 = vector.shape_cast %130 : vector<8x128xbf16> to vector<1x8x128xbf16>
    tpu.vector_store %arg7[%131, %c0_38, %c0_39], %134 {strides = array<i32>} : memref<8x8x128xbf16, #tpu.memory_space<vmem>>, vector<1x8x128xbf16>,
    %c3_i32 = arith.constant 3 : i32
    %135 = arith.truncf %129 : vector<8x128xf32> to vector<8x128xbf16>
    %cst_40 = arith.constant dense<0.000000e+00> : vector<8x384xf32>
    %136 = tpu.matmul %135, %3, %cst_40 {dimension_numbers = #tpu.dot_dimension_numbers<[1], [0], [0], [1], [0, 0, 1, 1], [], []>} : vector<8x128xbf16>, vector<128x384xbf16>, vector<8x384xf32> -> vector<8x384xf32>
    %137 = arith.index_cast %c3_i32 : i32 to index
    %c0_41 = arith.constant 0 : index
    %c0_42 = arith.constant 0 : index
    %138 = vector.load %arg9[%137, %c0_41, %c0_42] : memref<8x8x384xbf16, #tpu.memory_space<vmem>>, vector<1x8x384xbf16>
    %139 = vector.shape_cast %138 : vector<1x8x384xbf16> to vector<8x384xbf16>
    %140 = arith.extf %139 : vector<8x384xbf16> to vector<8x384xf32>
    %141 = vector.broadcast %5 : vector<1x384xf32> to vector<8x384xf32>
    %142 = arith.addf %140, %141 : vector<8x384xf32>
    %143 = vector.extract_strided_slice %142 {offsets = [0, 0], sizes = [8, 128], strides = [1, 1]} : vector<8x384xf32> to vector<8x128xf32>
    %144 = vector.extract_strided_slice %136 {offsets = [0, 0], sizes = [8, 128], strides = [1, 1]} : vector<8x384xf32> to vector<8x128xf32>
    %145 = arith.addf %143, %144 : vector<8x128xf32>
    %146 = arith.negf %145 : vector<8x128xf32>
    %147 = math.exp %146 : vector<8x128xf32>
    %cst_43 = arith.constant 1.000000e+00 : f32
    %148 = vector.broadcast %cst_43 : f32 to vector<8x128xf32>
    %149 = arith.addf %148, %147 : vector<8x128xf32>
    %150 = arith.divf %148, %149 : vector<8x128xf32>
    %151 = vector.extract_strided_slice %142 {offsets = [0, 128], sizes = [8, 128], strides = [1, 1]} : vector<8x384xf32> to vector<8x128xf32>
    %152 = vector.extract_strided_slice %136 {offsets = [0, 128], sizes = [8, 128], strides = [1, 1]} : vector<8x384xf32> to vector<8x128xf32>
    %153 = arith.addf %151, %152 : vector<8x128xf32>
    %154 = arith.negf %153 : vector<8x128xf32>
    %155 = math.exp %154 : vector<8x128xf32>
    %cst_44 = arith.constant 1.000000e+00 : f32
    %156 = vector.broadcast %cst_44 : f32 to vector<8x128xf32>
    %157 = arith.addf %156, %155 : vector<8x128xf32>
    %158 = arith.divf %156, %157 : vector<8x128xf32>
    %159 = vector.extract_strided_slice %142 {offsets = [0, 256], sizes = [8, 128], strides = [1, 1]} : vector<8x384xf32> to vector<8x128xf32>
    %160 = vector.extract_strided_slice %136 {offsets = [0, 256], sizes = [8, 128], strides = [1, 1]} : vector<8x384xf32> to vector<8x128xf32>
    %161 = vector.broadcast %7 : vector<1x128xf32> to vector<8x128xf32>
    %162 = arith.addf %160, %161 : vector<8x128xf32>
    %163 = arith.mulf %150, %162 : vector<8x128xf32>
    %164 = arith.addf %159, %163 : vector<8x128xf32>
    %165 = math.tanh %164 : vector<8x128xf32>
    %cst_45 = arith.constant 1.000000e+00 : f32
    %166 = vector.broadcast %cst_45 : f32 to vector<8x128xf32>
    %167 = arith.subf %166, %158 : vector<8x128xf32>
    %168 = arith.mulf %167, %165 : vector<8x128xf32>
    %169 = arith.mulf %158, %129 : vector<8x128xf32>
    %170 = arith.addf %168, %169 : vector<8x128xf32>
    %171 = arith.truncf %170 : vector<8x128xf32> to vector<8x128xbf16>
    %172 = arith.index_cast %c3_i32 : i32 to index
    %c0_46 = arith.constant 0 : index
    %c0_47 = arith.constant 0 : index
    %173 = vector.load %arg7[%172, %c0_46, %c0_47] : memref<8x8x128xbf16, #tpu.memory_space<vmem>>, vector<1x8x128xbf16>
    %174 = vector.shape_cast %173 : vector<1x8x128xbf16> to vector<8x128xbf16>
    %175 = vector.shape_cast %171 : vector<8x128xbf16> to vector<1x8x128xbf16>
    tpu.vector_store %arg7[%172, %c0_46, %c0_47], %175 {strides = array<i32>} : memref<8x8x128xbf16, #tpu.memory_space<vmem>>, vector<1x8x128xbf16>,
    %c4_i32 = arith.constant 4 : i32
    %176 = arith.truncf %170 : vector<8x128xf32> to vector<8x128xbf16>
    %cst_48 = arith.constant dense<0.000000e+00> : vector<8x384xf32>
    %177 = tpu.matmul %176, %3, %cst_48 {dimension_numbers = #tpu.dot_dimension_numbers<[1], [0], [0], [1], [0, 0, 1, 1], [], []>} : vector<8x128xbf16>, vector<128x384xbf16>, vector<8x384xf32> -> vector<8x384xf32>
    %178 = arith.index_cast %c4_i32 : i32 to index
    %c0_49 = arith.constant 0 : index
    %c0_50 = arith.constant 0 : index
    %179 = vector.load %arg9[%178, %c0_49, %c0_50] : memref<8x8x384xbf16, #tpu.memory_space<vmem>>, vector<1x8x384xbf16>
    %180 = vector.shape_cast %179 : vector<1x8x384xbf16> to vector<8x384xbf16>
    %181 = arith.extf %180 : vector<8x384xbf16> to vector<8x384xf32>
    %182 = vector.broadcast %5 : vector<1x384xf32> to vector<8x384xf32>
    %183 = arith.addf %181, %182 : vector<8x384xf32>
    %184 = vector.extract_strided_slice %183 {offsets = [0, 0], sizes = [8, 128], strides = [1, 1]} : vector<8x384xf32> to vector<8x128xf32>
    %185 = vector.extract_strided_slice %177 {offsets = [0, 0], sizes = [8, 128], strides = [1, 1]} : vector<8x384xf32> to vector<8x128xf32>
    %186 = arith.addf %184, %185 : vector<8x128xf32>
    %187 = arith.negf %186 : vector<8x128xf32>
    %188 = math.exp %187 : vector<8x128xf32>
    %cst_51 = arith.constant 1.000000e+00 : f32
    %189 = vector.broadcast %cst_51 : f32 to vector<8x128xf32>
    %190 = arith.addf %189, %188 : vector<8x128xf32>
    %191 = arith.divf %189, %190 : vector<8x128xf32>
    %192 = vector.extract_strided_slice %183 {offsets = [0, 128], sizes = [8, 128], strides = [1, 1]} : vector<8x384xf32> to vector<8x128xf32>
    %193 = vector.extract_strided_slice %177 {offsets = [0, 128], sizes = [8, 128], strides = [1, 1]} : vector<8x384xf32> to vector<8x128xf32>
    %194 = arith.addf %192, %193 : vector<8x128xf32>
    %195 = arith.negf %194 : vector<8x128xf32>
    %196 = math.exp %195 : vector<8x128xf32>
    %cst_52 = arith.constant 1.000000e+00 : f32
    %197 = vector.broadcast %cst_52 : f32 to vector<8x128xf32>
    %198 = arith.addf %197, %196 : vector<8x128xf32>
    %199 = arith.divf %197, %198 : vector<8x128xf32>
    %200 = vector.extract_strided_slice %183 {offsets = [0, 256], sizes = [8, 128], strides = [1, 1]} : vector<8x384xf32> to vector<8x128xf32>
    %201 = vector.extract_strided_slice %177 {offsets = [0, 256], sizes = [8, 128], strides = [1, 1]} : vector<8x384xf32> to vector<8x128xf32>
    %202 = vector.broadcast %7 : vector<1x128xf32> to vector<8x128xf32>
    %203 = arith.addf %201, %202 : vector<8x128xf32>
    %204 = arith.mulf %191, %203 : vector<8x128xf32>
    %205 = arith.addf %200, %204 : vector<8x128xf32>
    %206 = math.tanh %205 : vector<8x128xf32>
    %cst_53 = arith.constant 1.000000e+00 : f32
    %207 = vector.broadcast %cst_53 : f32 to vector<8x128xf32>
    %208 = arith.subf %207, %199 : vector<8x128xf32>
    %209 = arith.mulf %208, %206 : vector<8x128xf32>
    %210 = arith.mulf %199, %170 : vector<8x128xf32>
    %211 = arith.addf %209, %210 : vector<8x128xf32>
    %212 = arith.truncf %211 : vector<8x128xf32> to vector<8x128xbf16>
    %213 = arith.index_cast %c4_i32 : i32 to index
    %c0_54 = arith.constant 0 : index
    %c0_55 = arith.constant 0 : index
    %214 = vector.load %arg7[%213, %c0_54, %c0_55] : memref<8x8x128xbf16, #tpu.memory_space<vmem>>, vector<1x8x128xbf16>
    %215 = vector.shape_cast %214 : vector<1x8x128xbf16> to vector<8x128xbf16>
    %216 = vector.shape_cast %212 : vector<8x128xbf16> to vector<1x8x128xbf16>
    tpu.vector_store %arg7[%213, %c0_54, %c0_55], %216 {strides = array<i32>} : memref<8x8x128xbf16, #tpu.memory_space<vmem>>, vector<1x8x128xbf16>,
    %c5_i32 = arith.constant 5 : i32
    %217 = arith.truncf %211 : vector<8x128xf32> to vector<8x128xbf16>
    %cst_56 = arith.constant dense<0.000000e+00> : vector<8x384xf32>
    %218 = tpu.matmul %217, %3, %cst_56 {dimension_numbers = #tpu.dot_dimension_numbers<[1], [0], [0], [1], [0, 0, 1, 1], [], []>} : vector<8x128xbf16>, vector<128x384xbf16>, vector<8x384xf32> -> vector<8x384xf32>
    %219 = arith.index_cast %c5_i32 : i32 to index
    %c0_57 = arith.constant 0 : index
    %c0_58 = arith.constant 0 : index
    %220 = vector.load %arg9[%219, %c0_57, %c0_58] : memref<8x8x384xbf16, #tpu.memory_space<vmem>>, vector<1x8x384xbf16>
    %221 = vector.shape_cast %220 : vector<1x8x384xbf16> to vector<8x384xbf16>
    %222 = arith.extf %221 : vector<8x384xbf16> to vector<8x384xf32>
    %223 = vector.broadcast %5 : vector<1x384xf32> to vector<8x384xf32>
    %224 = arith.addf %222, %223 : vector<8x384xf32>
    %225 = vector.extract_strided_slice %224 {offsets = [0, 0], sizes = [8, 128], strides = [1, 1]} : vector<8x384xf32> to vector<8x128xf32>
    %226 = vector.extract_strided_slice %218 {offsets = [0, 0], sizes = [8, 128], strides = [1, 1]} : vector<8x384xf32> to vector<8x128xf32>
    %227 = arith.addf %225, %226 : vector<8x128xf32>
    %228 = arith.negf %227 : vector<8x128xf32>
    %229 = math.exp %228 : vector<8x128xf32>
    %cst_59 = arith.constant 1.000000e+00 : f32
    %230 = vector.broadcast %cst_59 : f32 to vector<8x128xf32>
    %231 = arith.addf %230, %229 : vector<8x128xf32>
    %232 = arith.divf %230, %231 : vector<8x128xf32>
    %233 = vector.extract_strided_slice %224 {offsets = [0, 128], sizes = [8, 128], strides = [1, 1]} : vector<8x384xf32> to vector<8x128xf32>
    %234 = vector.extract_strided_slice %218 {offsets = [0, 128], sizes = [8, 128], strides = [1, 1]} : vector<8x384xf32> to vector<8x128xf32>
    %235 = arith.addf %233, %234 : vector<8x128xf32>
    %236 = arith.negf %235 : vector<8x128xf32>
    %237 = math.exp %236 : vector<8x128xf32>
    %cst_60 = arith.constant 1.000000e+00 : f32
    %238 = vector.broadcast %cst_60 : f32 to vector<8x128xf32>
    %239 = arith.addf %238, %237 : vector<8x128xf32>
    %240 = arith.divf %238, %239 : vector<8x128xf32>
    %241 = vector.extract_strided_slice %224 {offsets = [0, 256], sizes = [8, 128], strides = [1, 1]} : vector<8x384xf32> to vector<8x128xf32>
    %242 = vector.extract_strided_slice %218 {offsets = [0, 256], sizes = [8, 128], strides = [1, 1]} : vector<8x384xf32> to vector<8x128xf32>
    %243 = vector.broadcast %7 : vector<1x128xf32> to vector<8x128xf32>
    %244 = arith.addf %242, %243 : vector<8x128xf32>
    %245 = arith.mulf %232, %244 : vector<8x128xf32>
    %246 = arith.addf %241, %245 : vector<8x128xf32>
    %247 = math.tanh %246 : vector<8x128xf32>
    %cst_61 = arith.constant 1.000000e+00 : f32
    %248 = vector.broadcast %cst_61 : f32 to vector<8x128xf32>
    %249 = arith.subf %248, %240 : vector<8x128xf32>
    %250 = arith.mulf %249, %247 : vector<8x128xf32>
    %251 = arith.mulf %240, %211 : vector<8x128xf32>
    %252 = arith.addf %250, %251 : vector<8x128xf32>
    %253 = arith.truncf %252 : vector<8x128xf32> to vector<8x128xbf16>
    %254 = arith.index_cast %c5_i32 : i32 to index
    %c0_62 = arith.constant 0 : index
    %c0_63 = arith.constant 0 : index
    %255 = vector.load %arg7[%254, %c0_62, %c0_63] : memref<8x8x128xbf16, #tpu.memory_space<vmem>>, vector<1x8x128xbf16>
    %256 = vector.shape_cast %255 : vector<1x8x128xbf16> to vector<8x128xbf16>
    %257 = vector.shape_cast %253 : vector<8x128xbf16> to vector<1x8x128xbf16>
    tpu.vector_store %arg7[%254, %c0_62, %c0_63], %257 {strides = array<i32>} : memref<8x8x128xbf16, #tpu.memory_space<vmem>>, vector<1x8x128xbf16>,
    %c6_i32 = arith.constant 6 : i32
    %258 = arith.truncf %252 : vector<8x128xf32> to vector<8x128xbf16>
    %cst_64 = arith.constant dense<0.000000e+00> : vector<8x384xf32>
    %259 = tpu.matmul %258, %3, %cst_64 {dimension_numbers = #tpu.dot_dimension_numbers<[1], [0], [0], [1], [0, 0, 1, 1], [], []>} : vector<8x128xbf16>, vector<128x384xbf16>, vector<8x384xf32> -> vector<8x384xf32>
    %260 = arith.index_cast %c6_i32 : i32 to index
    %c0_65 = arith.constant 0 : index
    %c0_66 = arith.constant 0 : index
    %261 = vector.load %arg9[%260, %c0_65, %c0_66] : memref<8x8x384xbf16, #tpu.memory_space<vmem>>, vector<1x8x384xbf16>
    %262 = vector.shape_cast %261 : vector<1x8x384xbf16> to vector<8x384xbf16>
    %263 = arith.extf %262 : vector<8x384xbf16> to vector<8x384xf32>
    %264 = vector.broadcast %5 : vector<1x384xf32> to vector<8x384xf32>
    %265 = arith.addf %263, %264 : vector<8x384xf32>
    %266 = vector.extract_strided_slice %265 {offsets = [0, 0], sizes = [8, 128], strides = [1, 1]} : vector<8x384xf32> to vector<8x128xf32>
    %267 = vector.extract_strided_slice %259 {offsets = [0, 0], sizes = [8, 128], strides = [1, 1]} : vector<8x384xf32> to vector<8x128xf32>
    %268 = arith.addf %266, %267 : vector<8x128xf32>
    %269 = arith.negf %268 : vector<8x128xf32>
    %270 = math.exp %269 : vector<8x128xf32>
    %cst_67 = arith.constant 1.000000e+00 : f32
    %271 = vector.broadcast %cst_67 : f32 to vector<8x128xf32>
    %272 = arith.addf %271, %270 : vector<8x128xf32>
    %273 = arith.divf %271, %272 : vector<8x128xf32>
    %274 = vector.extract_strided_slice %265 {offsets = [0, 128], sizes = [8, 128], strides = [1, 1]} : vector<8x384xf32> to vector<8x128xf32>
    %275 = vector.extract_strided_slice %259 {offsets = [0, 128], sizes = [8, 128], strides = [1, 1]} : vector<8x384xf32> to vector<8x128xf32>
    %276 = arith.addf %274, %275 : vector<8x128xf32>
    %277 = arith.negf %276 : vector<8x128xf32>
    %278 = math.exp %277 : vector<8x128xf32>
    %cst_68 = arith.constant 1.000000e+00 : f32
    %279 = vector.broadcast %cst_68 : f32 to vector<8x128xf32>
    %280 = arith.addf %279, %278 : vector<8x128xf32>
    %281 = arith.divf %279, %280 : vector<8x128xf32>
    %282 = vector.extract_strided_slice %265 {offsets = [0, 256], sizes = [8, 128], strides = [1, 1]} : vector<8x384xf32> to vector<8x128xf32>
    %283 = vector.extract_strided_slice %259 {offsets = [0, 256], sizes = [8, 128], strides = [1, 1]} : vector<8x384xf32> to vector<8x128xf32>
    %284 = vector.broadcast %7 : vector<1x128xf32> to vector<8x128xf32>
    %285 = arith.addf %283, %284 : vector<8x128xf32>
    %286 = arith.mulf %273, %285 : vector<8x128xf32>
    %287 = arith.addf %282, %286 : vector<8x128xf32>
    %288 = math.tanh %287 : vector<8x128xf32>
    %cst_69 = arith.constant 1.000000e+00 : f32
    %289 = vector.broadcast %cst_69 : f32 to vector<8x128xf32>
    %290 = arith.subf %289, %281 : vector<8x128xf32>
    %291 = arith.mulf %290, %288 : vector<8x128xf32>
    %292 = arith.mulf %281, %252 : vector<8x128xf32>
    %293 = arith.addf %291, %292 : vector<8x128xf32>
    %294 = arith.truncf %293 : vector<8x128xf32> to vector<8x128xbf16>
    %295 = arith.index_cast %c6_i32 : i32 to index
    %c0_70 = arith.constant 0 : index
    %c0_71 = arith.constant 0 : index
    %296 = vector.load %arg7[%295, %c0_70, %c0_71] : memref<8x8x128xbf16, #tpu.memory_space<vmem>>, vector<1x8x128xbf16>
    %297 = vector.shape_cast %296 : vector<1x8x128xbf16> to vector<8x128xbf16>
    %298 = vector.shape_cast %294 : vector<8x128xbf16> to vector<1x8x128xbf16>
    tpu.vector_store %arg7[%295, %c0_70, %c0_71], %298 {strides = array<i32>} : memref<8x8x128xbf16, #tpu.memory_space<vmem>>, vector<1x8x128xbf16>,
    %c7_i32 = arith.constant 7 : i32
    %299 = arith.truncf %293 : vector<8x128xf32> to vector<8x128xbf16>
    %cst_72 = arith.constant dense<0.000000e+00> : vector<8x384xf32>
    %300 = tpu.matmul %299, %3, %cst_72 {dimension_numbers = #tpu.dot_dimension_numbers<[1], [0], [0], [1], [0, 0, 1, 1], [], []>} : vector<8x128xbf16>, vector<128x384xbf16>, vector<8x384xf32> -> vector<8x384xf32>
    %301 = arith.index_cast %c7_i32 : i32 to index
    %c0_73 = arith.constant 0 : index
    %c0_74 = arith.constant 0 : index
    %302 = vector.load %arg9[%301, %c0_73, %c0_74] : memref<8x8x384xbf16, #tpu.memory_space<vmem>>, vector<1x8x384xbf16>
    %303 = vector.shape_cast %302 : vector<1x8x384xbf16> to vector<8x384xbf16>
    %304 = arith.extf %303 : vector<8x384xbf16> to vector<8x384xf32>
    %305 = vector.broadcast %5 : vector<1x384xf32> to vector<8x384xf32>
    %306 = arith.addf %304, %305 : vector<8x384xf32>
    %307 = vector.extract_strided_slice %306 {offsets = [0, 0], sizes = [8, 128], strides = [1, 1]} : vector<8x384xf32> to vector<8x128xf32>
    %308 = vector.extract_strided_slice %300 {offsets = [0, 0], sizes = [8, 128], strides = [1, 1]} : vector<8x384xf32> to vector<8x128xf32>
    %309 = arith.addf %307, %308 : vector<8x128xf32>
    %310 = arith.negf %309 : vector<8x128xf32>
    %311 = math.exp %310 : vector<8x128xf32>
    %cst_75 = arith.constant 1.000000e+00 : f32
    %312 = vector.broadcast %cst_75 : f32 to vector<8x128xf32>
    %313 = arith.addf %312, %311 : vector<8x128xf32>
    %314 = arith.divf %312, %313 : vector<8x128xf32>
    %315 = vector.extract_strided_slice %306 {offsets = [0, 128], sizes = [8, 128], strides = [1, 1]} : vector<8x384xf32> to vector<8x128xf32>
    %316 = vector.extract_strided_slice %300 {offsets = [0, 128], sizes = [8, 128], strides = [1, 1]} : vector<8x384xf32> to vector<8x128xf32>
    %317 = arith.addf %315, %316 : vector<8x128xf32>
    %318 = arith.negf %317 : vector<8x128xf32>
    %319 = math.exp %318 : vector<8x128xf32>
    %cst_76 = arith.constant 1.000000e+00 : f32
    %320 = vector.broadcast %cst_76 : f32 to vector<8x128xf32>
    %321 = arith.addf %320, %319 : vector<8x128xf32>
    %322 = arith.divf %320, %321 : vector<8x128xf32>
    %323 = vector.extract_strided_slice %306 {offsets = [0, 256], sizes = [8, 128], strides = [1, 1]} : vector<8x384xf32> to vector<8x128xf32>
    %324 = vector.extract_strided_slice %300 {offsets = [0, 256], sizes = [8, 128], strides = [1, 1]} : vector<8x384xf32> to vector<8x128xf32>
    %325 = vector.broadcast %7 : vector<1x128xf32> to vector<8x128xf32>
    %326 = arith.addf %324, %325 : vector<8x128xf32>
    %327 = arith.mulf %314, %326 : vector<8x128xf32>
    %328 = arith.addf %323, %327 : vector<8x128xf32>
    %329 = math.tanh %328 : vector<8x128xf32>
    %cst_77 = arith.constant 1.000000e+00 : f32
    %330 = vector.broadcast %cst_77 : f32 to vector<8x128xf32>
    %331 = arith.subf %330, %322 : vector<8x128xf32>
    %332 = arith.mulf %331, %329 : vector<8x128xf32>
    %333 = arith.mulf %322, %293 : vector<8x128xf32>
    %334 = arith.addf %332, %333 : vector<8x128xf32>
    %335 = arith.truncf %334 : vector<8x128xf32> to vector<8x128xbf16>
    %336 = arith.index_cast %c7_i32 : i32 to index
    %c0_78 = arith.constant 0 : index
    %c0_79 = arith.constant 0 : index
    %337 = vector.load %arg7[%336, %c0_78, %c0_79] : memref<8x8x128xbf16, #tpu.memory_space<vmem>>, vector<1x8x128xbf16>
    %338 = vector.shape_cast %337 : vector<1x8x128xbf16> to vector<8x128xbf16>
    %339 = vector.shape_cast %335 : vector<8x128xbf16> to vector<1x8x128xbf16>
    tpu.vector_store %arg7[%336, %c0_78, %c0_79], %339 {strides = array<i32>} : memref<8x8x128xbf16, #tpu.memory_space<vmem>>, vector<1x8x128xbf16>,
    %c7_i32_80 = arith.constant 7 : i32
    %c0_81 = arith.constant 0 : index
    %c0_82 = arith.constant 0 : index
    %c0_83 = arith.constant 0 : index
    %340 = vector.load %arg8[%c0_81, %c0_82, %c0_83] : memref<1x8x128xf32, #tpu.memory_space<vmem>>, vector<1x8x128xf32>
    %341 = vector.shape_cast %340 : vector<1x8x128xf32> to vector<8x128xf32>
    %342 = vector.shape_cast %334 : vector<8x128xf32> to vector<1x8x128xf32>
    tpu.vector_store %arg8[%c0_81, %c0_82, %c0_83], %342 {strides = array<i32>} : memref<1x8x128xf32, #tpu.memory_space<vmem>>, vector<1x8x128xf32>,
    return
  }
  func.func @transform_0(%arg0: i32, %arg1: i32) -> (i32, i32, i32) {
    %c0_i32 = arith.constant 0 : i32
    %c0_i32_0 = arith.constant 0 : i32
    %c0_i32_1 = arith.constant 0 : i32
    return %c0_i32, %arg0, %c0_i32_0 : i32, i32, i32
  }
  func.func @transform_1(%arg0: i32, %arg1: i32) -> (i32, i32, i32) {
    %c0_i32 = arith.constant 0 : i32
    %c0_i32_0 = arith.constant 0 : i32
    %c0_i32_1 = arith.constant 0 : i32
    return %arg1, %c0_i32, %c0_i32_0 : i32, i32, i32
  }
  func.func @transform_2(%arg0: i32, %arg1: i32) -> (i32, i32, i32) {
    %c0_i32 = arith.constant 0 : i32
    %c0_i32_0 = arith.constant 0 : i32
    %c0_i32_1 = arith.constant 0 : i32
    return %arg1, %c0_i32, %c0_i32_0 : i32, i32, i32
  }
  func.func @transform_3(%arg0: i32, %arg1: i32) -> (i32, i32, i32) {
    %c0_i32 = arith.constant 0 : i32
    %c0_i32_0 = arith.constant 0 : i32
    %c0_i32_1 = arith.constant 0 : i32
    return %arg1, %c0_i32, %c0_i32_0 : i32, i32, i32
  }
  func.func @transform_4(%arg0: i32, %arg1: i32) -> (i32, i32, i32) {
    %c0_i32 = arith.constant 0 : i32
    %c0_i32_0 = arith.constant 0 : i32
    %c0_i32_1 = arith.constant 0 : i32
    return %arg1, %c0_i32, %c0_i32_0 : i32, i32, i32
  }
  func.func @transform_5(%arg0: i32, %arg1: i32) -> (i32, i32, i32) {
    %c0_i32 = arith.constant 0 : i32
    %c0_i32_0 = arith.constant 0 : i32
    %c0_i32_1 = arith.constant 0 : i32
    return %c0_i32, %arg0, %c0_i32_0 : i32, i32, i32
  }
  func.func @transform_6(%arg0: i32, %arg1: i32) -> (i32, i32, i32) {
    %c0_i32 = arith.constant 0 : i32
    %c0_i32_0 = arith.constant 0 : i32
    return %arg1, %arg0, %c0_i32 : i32, i32, i32
  }
}

</mosaic_0001>

<bundles_post_ra>
// kernel: tpu_custom_call.1
= control target key start
LH: loop header
LB: loop body
LE: loop exit
PB: predicated region body
PF: predicated region fallthrough
CT: control target
= control target key end

     0   :  { %s4368_s0 = inlined_call_operand.hbm [shape: bf16[8,8,128], index: 0, kind: input, shape index: {}]   ;;  %s4369_s1 = inlined_call_operand.hbm [shape: bf16[2,128,384], index: 1, kind: input, shape index: {}]   ;;  %s4370_s2 = inlined_call_operand.hbm [shape: bf16[2,128,384], index: 2, kind: input, shape index: {}]   ;;  %s4371_s3 = inlined_call_operand.hbm [shape: f32[2,1,384], index: 3, kind: input, shape index: {}]   ;;  %s4372_s4 = inlined_call_operand.vmem [shape: f32[2,1,128], index: 4, kind: input, shape index: {}]   ;;  %s4373_s5 = inlined_call_operand.hbm [shape: bf16[8,8,128], index: 5, kind: output, shape index: {0}]   ;;  %s4374_s6 = inlined_call_operand.hbm [shape: f32[2,8,128], index: 6, kind: output, shape index: {1}]  }
   0x1   :  { %4393 = sst [smem:[#allocation43_spill]] %s4368_s0 }
   0x2   :  { %4394 = sst [smem:[#allocation44_spill]] %s4369_s1 }
   0x3   :  { %4395 = sst [smem:[#allocation45_spill]] %s4370_s2 }
   0x4   :  { %12 = vsyncpa [#allocation4], 0 }
   0x5   :  { %13 = vsyncpa [#allocation7], 0 }
   0x6   :  { %15 = vsyncpa [#allocation7 + $0x1], 0 }
   0x7   :  { %16 = vsyncpa [#allocation10], 0 }
   0x8   :  { %18 = vsyncpa [#allocation10 + $0x1], 0 }
   0x9   :  { %19 = vsyncpa [#allocation5], 0 }
   0xa   :  { %20 = vsyncpa [#allocation13], 0 }
   0xb   :  { %22 = vsyncpa [#allocation13 + $0x1], 0  ;;  %s3372_s21 = smov 0   ;;  %s3374_s22 = smov 0  }
   0xc   :  { %s3376_s23 = smov 0   ;;  %s3378_s24 = smov 0  }
   0xd   :  { %s3380_s25 = smov 0   ;;  %s3382_s26 = smov 0  }
   0xe LB: > { %4396 = sst [smem:[#allocation19_spill]] %s3306_s23  ;;  %s37_s27 = sadd.s32 1, %s3314_s25  ;;  %s3318_s26 = sphi %s3382_s26, %s28_s26   ;;  %s3314_s25 = sphi %s3380_s25, %s4467_s25   ;;  %s3310_s24 = sphi %s3378_s24, %s4466_s24   ;;  %s3306_s23 = sphi %s3376_s23, %s4462_s23   ;;  %s3302_s22 = sphi %s3374_s22, %s4465_s22   ;;  %s3298_s21 = sphi %s3372_s21, %s4464_s21  }
   0xf   : > { %4397 = sst [smem:[#allocation20_spill]] %s3318_s26  ;;  %s73_s28 = sadd.s32 1, %s3306_s23 }
  0x10   : > { %p38_p0 = scmp.ge.s32.totalorder %s37_s27, 2  ;;  %p80_p1 = scmp.ne.s32.totalorder %s3306_s23, %s3302_s22 }
  0x11   : > { %p81_p2 = scmp.eq.s32.totalorder %s3318_s26, 0  ;;  %p2938_p5 = scmp.lt.s32.totalorder %s3318_s26, 2 }
  0x12   : > { %s4469_s27 = smov (%p38_p0, %s37_s27), 0  ;;  %s257_s30 = sand.u32 1, %s3318_s26  }
  0x13   : > { %4398 = sst [smem:[#allocation21_spill]] %s4469_s27  ;;  %p82_p4 = por %p81_p2, %p80_p1 }
  0x14   : > { %s70_s29 = ssub.s32 %s3314_s25, %s4469_s27  ;;  %s3418_s7 = sand.u32 1, %s3306_s23  }
  0x15   : > { %p71_p6 = scmp.eq.s32.totalorder %s70_s29, 0  ;;  %s2896_s8 = smul.u32 3072, %s3314_s25 }
  0x16   : > { %s2895_s10 = smul.u32 192, %s3418_s7  ;;  %s4400_s1 = sld [smem:[#allocation44_spill]] }
  0x17   : > { %s3422_s9 = scalar_select %p71_p6, %s3306_s23, %s73_s28  }
  0x18   : > { %p3430_p7 = pnand %p2938_p5, %p82_p4  ;;  %s261_s15 = scalar_lea.vmem [#allocation6], %s2895_s10 }
  0x19   : > { %4399 = sst [smem:[#allocation22_spill]] %s3422_s9  ;;  %s268_s16 = sshll.u32 %s261_s15, 4  ;;  %s269_s16 = int_to_ptr.vmem [resolvable:$true] %s268_s16 }
  0x1a   : > { %s3436_s17 = scalar_lea.sflag [#allocation7], %s257_s30  ;;  %p4379_p8 = pneg %p3430_p7 }
  0x1b   : > { %s3105_s18 = scalar_lea.vmem %s269_s16, 3072  ;;  %s3320_s19 = smov [#allocation6]  }
  0x1c   : > { %s267_s13 = scalar_lea.hbm %s4400_s1, %s2896_s8  ;;  %p3106_p9 = scmp.ne.s32.totalorder %s269_s16, %s3105_s18 }
  0x1d   : > { %s3110_s20 = sshll.u32 %s3320_s19, 4  ;;  %s3111_s20 = int_to_ptr.vmem [resolvable:$false] %s3110_s20 }
  0x1e   : > { %p3108_p10 = pnand %p3106_p9, %p4379_p8  ;;  %s3112_s28 = scalar_lea.vmem %s3111_s20, 6144 }
  0x1f   : > { %p3113_p12 = scmp.lt.s32.totalorder %s269_s16, %s3111_s20  ;;  %p3114_p13 = scmp.lt.s32.totalorder %s3112_s28, %s3105_s18 }
  0x20   : > { %p3109_p11 = pneg %p3108_p10 }
  0x21   : > { %p3115_p0 = por %p3114_p13, %p3113_p12 }
  0x23   : > { %p3116_p2 = pnand %p3115_p0, %p3109_p11 }
  0x25   : > { %3119 = shalt.err (!%p3116_p2)
}
  0x26   : > { %s4375_s29 = smov 192   ;;  %s4376_s30 = smov 12  }
  0x27   : > { %2926 = dma.hbm_to_vmem [thread:$0]  (!%p3430_p7), %s267_s13, 3072, %s269_s16, %s3436_s17, %s4375_s29, %s4375_s29, %s4376_s30  }
  0x28   : > { %s3450_s11 = sadd.s32 4294967295, %s3318_s26   ;;  %s2441_s12 = sadd.s32 4294967294, %s3318_s26  }
  0x29   : > { %p86_p4 = scmp.ne.s32.totalorder %s3302_s22, %s3298_s21  ;;  %p87_p5 = scmp.eq.s32.totalorder %s3450_s11, 0 }
  0x2a   : > { %p4378_p6 = scmp.eq.s32.totalorder %s3450_s11, 1  ;;  %p222_p9 = scmp.eq.s32.totalorder %s2441_s12, 1 }
  0x2b   : > { %p2442_p10 = scmp.ge.s32.totalorder %s3318_s26, 1  ;;  %p3460_p11 = por %p87_p5, %p86_p4 }
  0x2c   : > { %p3469_p12 = por %p4378_p6, %p80_p1  ;;  %p3473_p13 = por %p222_p9, %p86_p4 }
  0x2d   : > { %p229_p0 = scmp.lt.s32.totalorder %s3318_s26, 3  ;;  %s3323_s19 = smov [#allocation3]  }
  0x2e   : > { %s4404_s16 = scalar_select %p3473_p13, 1, 0 }
  0x2f   : > { %p3478_p2 = pnand %p2442_p10, %p229_p0  ;;  %s243_s20 = sshll.u32 %s3323_s19, 4  ;;  %s244_s20 = int_to_ptr.vmem [resolvable:$true] %s243_s20 }
  0x30   : > { %s4406_s2 = sld [smem:[#allocation45_spill]]  ;;  %s282_s1 = scalar_lea.vmem [#allocation8], %s2895_s10 }
  0x31   : > { %p2919_p3 = pneg %p3478_p2  ;;  %s289_s27 = sshll.u32 %s282_s1, 4  ;;  %s3499_s27 = int_to_ptr.vmem [resolvable:$true] %s289_s27 }
  0x32   : > { %s3131_s9 = scalar_lea.vmem %s244_s20, 512  ;;  %p3139_p6 = scmp.lt.s32.totalorder %s244_s20, %s244_s20 }
  0x33   : > { %p3493_p1 = pnand %p2919_p3, %p87_p5  ;;  %p3132_p9 = scmp.ne.s32.totalorder %s244_s20, %s3131_s9 }
  0x34   : > { %p3140_p8 = scmp.lt.s32.totalorder %s3131_s9, %s3131_s9 }
  0x35   : > { %p3122_p4 = pneg %p3493_p1 }
  0x36   : > { %s3489_s29 = scalar_lea.hbm %s4406_s2, %s2896_s8  ;;  %p3141_p13 = por %p3140_p8, %p3139_p6 }
  0x37   : > { %p3134_p10 = pnand %p3132_p9, %p3122_p4 }
  0x39   : > { %p3135_p0 = pneg %p3134_p10 }
  0x3b   : > { %p3142_p3 = pnand %p3141_p13, %p3135_p0 }
  0x3d   : > { %3145 = shalt.err (!%p3142_p3)
}
  0x3e   : > { %s3324_s8 = smov 64   ;;  %s3325_s1 = smov 4  }
  0x3f   : > { %s4408_s0 = sld [smem:[#allocation43_spill]]  ;;  %s3159_s12 = scalar_lea.vmem %s3499_s27, 3072 }
  0x40   : > { %p3160_p4 = scmp.ne.s32.totalorder %s3499_s27, %s3159_s12  ;;  %p4409_p9 = pneg %p3430_p7 }
  0x41   : > { %s3326_s9 = smov [#allocation8]  }
  0x42   : > { %p3162_p10 = pnand %p3160_p4, %p4409_p9  ;;  %s3164_s19 = sshll.u32 %s3326_s9, 4  ;;  %s3165_s19 = int_to_ptr.vmem [resolvable:$false] %s3164_s19 }
  0x43   : > { %s3166_s2 = scalar_lea.vmem %s3165_s19, 6144  ;;  %p3167_p6 = scmp.lt.s32.totalorder %s3499_s27, %s3165_s19 }
  0x44   : > { %p3163_p8 = pneg %p3162_p10  ;;  %p3168_p13 = scmp.lt.s32.totalorder %s3166_s2, %s3159_s12 }
  0x45   : > { %2922 = dma.hbm_to_vmem [thread:$0]  (!%p3493_p1), %s4408_s0, 512, %s244_s20, [#allocation4], %s3324_s8, %s3324_s8, %s3325_s1  }
  0x46   : > { %p3169_p0 = por %p3168_p13, %p3167_p6 }
  0x48   : > { %p3170_p3 = pnand %p3169_p0, %p3163_p8 }
  0x4a   : > { %3173 = shalt.err (!%p3170_p3)
}
  0x4b   : > { %s4410_s30 = smov 12   ;;  %s4411_s10 = smov 192  }
  0x4c   : > { %2929 = dma.hbm_to_vmem [thread:$0]  (!%p3430_p7), %s3489_s29, 3072, %s3499_s27, %s3436_s17, %s4411_s10, %s4411_s10, %s4410_s30  }
  0x4d   : > { %s2900_s20 = smul.u32 48, %s3314_s25  ;;  %s300_s9 = scalar_lea.sflag [#allocation10], %s3418_s7 }
  0x4e   : > { %s4412_s8 = smul.u32 3, %s3418_s7  ;;  %p4413_p4 = pmov %p4409_p9 }
  0x4f   : > { %s309_s12 = scalar_lea.hbm %s4371_s3, %s2900_s20  ;;  %s3327_s23 = smov [#allocation9]  }
  0x50   : > { %s303_s19 = scalar_lea.vmem [#allocation9], %s4412_s8  ;;  %s3192_s26 = sshll.u32 %s3327_s23, 4  ;;  %s3193_s26 = int_to_ptr.vmem [resolvable:$false] %s3192_s26 }
  0x51   : > { %s311_s2 = sshll.u32 %s303_s19, 4  ;;  %s3194_s27 = scalar_lea.vmem %s3193_s26, 96  ;;  %s312_s2 = int_to_ptr.vmem [resolvable:$true] %s311_s2 }
  0x52   : > { %s3187_s0 = scalar_lea.vmem %s312_s2, 48  ;;  %p3195_p8 = scmp.lt.s32.totalorder %s312_s2, %s3193_s26 }
  0x53   : > { %p3188_p1 = scmp.ne.s32.totalorder %s312_s2, %s3187_s0  ;;  %p3196_p6 = scmp.lt.s32.totalorder %s3194_s27, %s3187_s0 }
  0x55   : > { %p3190_p9 = pnand %p3188_p1, %p4413_p4  ;;  %p3197_p13 = por %p3196_p6, %p3195_p8 }
  0x57   : > { %p3191_p10 = pneg %p3190_p9 }
  0x59   : > { %p3198_p0 = pnand %p3197_p13, %p3191_p10 }
  0x5b   : > { %3201 = shalt.err (!%p3198_p0)
}
  0x5c   : > { %2932 = dma.hbm_to_vmem [thread:$0]  (!%p3430_p7), %s309_s12, 48, %s312_s2, %s300_s9  }
  0x5d   : > { %326 = sbr.rel (%p3478_p2) target bundleno = 2516 (0x9d4), region = 40 }
  0x62   : > { %3277 = dma.done.wait (%p87_p5), [#allocation4], 512  }
  0x63   : > { %3279 = vsyncadd (%p87_p5), [#allocation4], 4294966784  ;;  %s332_s23 = sand.u32 1, %s3450_s11   ;;  %s3543_s0 = sand.u32 1, %s3302_s22  }
  0x64   : > { %s2901_s26 = smul.u32 192, %s3543_s0  ;;  %s333_s7 = scalar_lea.sflag [#allocation7], %s332_s23 }
  0x66   : > { %s3546_s14 = scalar_lea.vmem [#allocation6], %s2901_s26 }
  0x67   : > { %3281 = dma.done.wait (%p3460_p11), %s333_s7, 6144  }
  0x68   : > { %3283 = vsyncadd (%p3460_p11), %s333_s7, 4294961152  ;;  %s2902_s17 = smul.u32 3, %s3543_s0  ;;  %s3553_s29 = scalar_lea.vmem [#allocation8], %s2901_s26 }
  0x69   : > { %s351_s18 = scalar_lea.sflag [#allocation10], %s3543_s0 }
  0x6a   : > { %s3556_s30 = scalar_lea.vmem [#allocation9], %s2902_s17 }
  0x6b   : > { %3285 = dma.done.wait (%p3460_p11), %s351_s18, 48  }
  0x6c   : > { %3287 = vsyncadd (%p3460_p11), %s351_s18, 4294967248  ;;  %s2450_s10 = sshll.u32 %s3543_s0, 3  ;;  %v3564_v0 = vld [vmem:[%s3546_s14] sm:$0xff]  ;;  %v3567_v1 = vld [vmem:[%s3546_s14 + $0x8] sm:$0xf]  ;;  %p396_p7 = scmp.lt.s32.totalorder %s3310_s24, 1 }
  0x6d   : > { %v3570_v2 = vld [vmem:[%s3546_s14 + $0xc] sm:$0xff]  ;;  %v3573_v3 = vld [vmem:[%s3546_s14 + $0x14] sm:$0xf]  ;;  %v3576_v4 = vld [vmem:[%s3546_s14 + $0x18] sm:$0xff]  ;;  %s3767_s2 = scalar_lea.vmem [#allocation12], %s2450_s10  ;;  %p2451_p5 = scmp.ne.s32.totalorder %s3310_s24, 0 }
  0x6e   : > { %v3579_v5 = vld [vmem:[%s3546_s14 + $0x20] sm:$0xf]  ;;  %v3582_v6 = vld [vmem:[%s3546_s14 + $0x24] sm:$0xff]  ;;  %v3585_v7 = vld [vmem:[%s3546_s14 + $0x2c] sm:$0xf]  ;;  %s397_s15 = scalar_select %p396_p7, %s3310_s24, 1 }
  0x6f   : > { %v3588_v8 = vld [vmem:[%s3546_s14 + $0x30] sm:$0xff]  ;;  %v3591_v9 = vld [vmem:[%s3546_s14 + $0x38] sm:$0xf]  ;;  %v3594_v10 = vld [vmem:[%s3546_s14 + $0x3c] sm:$0xff] }
  0x70   : > { %v3597_v11 = vld [vmem:[%s3546_s14 + $0x44] sm:$0xf]  ;;  %v3600_v12 = vld [vmem:[%s3546_s14 + $0x48] sm:$0xff]  ;;  %v3603_v13 = vld [vmem:[%s3546_s14 + $0x50] sm:$0xf]  ;;  %s398_s19 = scalar_lea.vmem %s4372_s4, %s397_s15 }
  0x71   : > { %v3606_v14 = vld [vmem:[%s3546_s14 + $0x54] sm:$0xff]  ;;  %v3609_v15 = vld [vmem:[%s3546_s14 + $0x5c] sm:$0xf]  ;;  %v3612_v16 = vld [vmem:[%s3546_s14 + $0x60] sm:$0xff] }
  0x72   : > { %v3615_v17 = vld [vmem:[%s3546_s14 + $0x68] sm:$0xf]  ;;  %v3618_v18 = vld [vmem:[%s3546_s14 + $0x6c] sm:$0xff]  ;;  %v3621_v19 = vld [vmem:[%s3546_s14 + $0x74] sm:$0xf] }
  0x73   : > { %v3624_v20 = vld [vmem:[%s3546_s14 + $0x78] sm:$0xff]  ;;  %v3627_v21 = vld [vmem:[%s3546_s14 + $0x80] sm:$0xf]  ;;  %v3630_v22 = vld [vmem:[%s3546_s14 + $0x84] sm:$0xff] }
  0x74   : > { %v3633_v23 = vld [vmem:[%s3546_s14 + $0x8c] sm:$0xf]  ;;  %v3636_v24 = vld [vmem:[%s3546_s14 + $0x90] sm:$0xff]  ;;  %v3639_v25 = vld [vmem:[%s3546_s14 + $0x98] sm:$0xf] }
  0x75   : > { %v3642_v26 = vld [vmem:[%s3546_s14 + $0x9c] sm:$0xff]  ;;  %v3645_v27 = vld [vmem:[%s3546_s14 + $0xa4] sm:$0xf]  ;;  %v3648_v28 = vld [vmem:[%s3546_s14 + $0xa8] sm:$0xff] }
  0x76   : > { %v3651_v29 = vld [vmem:[%s3546_s14 + $0xb0] sm:$0xf]  ;;  %v3655_v30 = vld [vmem:[%s3546_s14 + $0xb4] sm:$0xff]  ;;  %v3658_v31 = vld [vmem:[%s3546_s14 + $0xbc] sm:$0xf] }
  0x77   : > { %v3661_v32 = vld [vmem:[%s3553_s29] sm:$0xff]  ;;  %v3664_v33 = vld [vmem:[%s3553_s29 + $0x8] sm:$0xf]  ;;  %v3667_v34 = vld [vmem:[%s3553_s29 + $0xc] sm:$0xff] }
  0x78   : > { %4414 = vst [vmem:[#allocation23_spill] sm:$0xff] %v3661_v32  ;;  %4415 = vst [vmem:[#allocation24_spill] sm:$0xff] %v3664_v33  ;;  %v3670_v35 = vld [vmem:[%s3553_s29 + $0x14] sm:$0xf]  ;;  %v3673_v36 = vld [vmem:[%s3553_s29 + $0x18] sm:$0xff] }
  0x79   : > { %4416 = vst [vmem:[#allocation25_spill] sm:$0xff] %v3667_v34  ;;  %4417 = vst [vmem:[#allocation26_spill] sm:$0xff] %v3670_v35  ;;  %v3676_v37 = vld [vmem:[%s3553_s29 + $0x20] sm:$0xf]  ;;  %v3679_v38 = vld [vmem:[%s3553_s29 + $0x24] sm:$0xff] }
  0x7a   : > { %4418 = vst [vmem:[#allocation27_spill] sm:$0xff] %v3673_v36  ;;  %4419 = vst [vmem:[#allocation28_spill] sm:$0xff] %v3676_v37  ;;  %v3682_v39 = vld [vmem:[%s3553_s29 + $0x2c] sm:$0xf]  ;;  %v3685_v40 = vld [vmem:[%s3553_s29 + $0x30] sm:$0xff] }
  0x7b   : > { %4420 = vst [vmem:[#allocation29_spill] sm:$0xff] %v3679_v38  ;;  %4421 = vst [vmem:[#allocation30_spill] sm:$0xff] %v3682_v39  ;;  %v3688_v41 = vld [vmem:[%s3553_s29 + $0x38] sm:$0xf]  ;;  %v3692_v42 = vld [vmem:[%s3553_s29 + $0x3c] sm:$0xff] }
  0x7c   : > { %4422 = vst [vmem:[#allocation31_spill] sm:$0xff] %v3685_v40  ;;  %4423 = vst [vmem:[#allocation32_spill] sm:$0xff] %v3688_v41  ;;  %v3695_v43 = vld [vmem:[%s3553_s29 + $0x44] sm:$0xf]  ;;  %v3698_v44 = vld [vmem:[%s3553_s29 + $0x48] sm:$0xff] }
  0x7d   : > { %4424 = vst [vmem:[#allocation33_spill] sm:$0xff] %v3692_v42  ;;  %4425 = vst [vmem:[#allocation34_spill] sm:$0xff] %v3695_v43  ;;  %v3701_v45 = vld [vmem:[%s3553_s29 + $0x50] sm:$0xf]  ;;  %v3704_v46 = vld [vmem:[%s3553_s29 + $0x54] sm:$0xff] }
  0x7e   : > { %4426 = vst [vmem:[#allocation35_spill] sm:$0xff] %v3698_v44  ;;  %4427 = vst [vmem:[#allocation36_spill] sm:$0xff] %v3701_v45  ;;  %v3707_v47 = vld [vmem:[%s3553_s29 + $0x5c] sm:$0xf]  ;;  %v3710_v48 = vld [vmem:[%s3553_s29 + $0x60] sm:$0xff] }
  0x7f   : > { %4428 = vst [vmem:[#allocation37_spill] sm:$0xff] %v3704_v46  ;;  %4429 = vst [vmem:[#allocation38_spill] sm:$0xff] %v3707_v47  ;;  %v3713_v49 = vld [vmem:[%s3553_s29 + $0x68] sm:$0xf]  ;;  %v3716_v50 = vld [vmem:[%s3553_s29 + $0x6c] sm:$0xff] }
  0x80   : > { %4430 = vst [vmem:[#allocation39_spill] sm:$0xff] %v3713_v49  ;;  %v3719_v51 = vld [vmem:[%s3553_s29 + $0x74] sm:$0xf]  ;;  %v3722_v52 = vld [vmem:[%s3553_s29 + $0x78] sm:$0xff]  ;;  %v3725_v53 = vld [vmem:[%s3553_s29 + $0x80] sm:$0xf] }
  0x81   : > { %4431 = vst [vmem:[#allocation40_spill] sm:$0xff] %v3719_v51  ;;  %v3731_v54 = vld [vmem:[%s3553_s29 + $0x84] sm:$0xff]  ;;  %v3734_v55 = vld [vmem:[%s3553_s29 + $0x8c] sm:$0xf]  ;;  %v3737_v56 = vld [vmem:[%s3553_s29 + $0x90] sm:$0xff] }
  0x82   : > { %v3740_v57 = vld [vmem:[%s3553_s29 + $0x98] sm:$0xf]  ;;  %v3743_v58 = vld [vmem:[%s3553_s29 + $0x9c] sm:$0xff]  ;;  %v3746_v59 = vld [vmem:[%s3553_s29 + $0xa4] sm:$0xf]  ;;  %469 = sbr.rel (%p2451_p5) target bundleno = 395 (0x18b), region = 60 }
  0x83   : > { %v3749_v60 = vld [vmem:[%s3553_s29 + $0xa8] sm:$0xff]  ;;  %v3752_v61 = vld [vmem:[%s3553_s29 + $0xb0] sm:$0xf]  ;;  %v3755_v62 = vld [vmem:[%s3553_s29 + $0xb4] sm:$0xff] }
  0x84   : > { %v3758_v63 = vld [vmem:[%s3553_s29 + $0xbc] sm:$0xf]  ;;  %v3761_v33 = vld [vmem:[%s3556_s30] sm:$0x7] }
  0x85   : > { %4432 = vst [vmem:[#allocation41_spill] sm:$0xff] %v3761_v33  ;;  %v3763_v35 = vld [vmem:[%s398_s19] ss:$0 sm:$0xff] }
  0x86   : > { %4433 = vst [vmem:[#allocation42_spill] sm:$0xff] %v3763_v35 }
  0x87   : > { %v2478_v37 = vcombine.high %v3648_v28, %v3655_v30  ;;  %v2477_v39 = vcombine.low %v3648_v28, %v3655_v30  ;;  %v2475_v32 = vcombine.high %v3636_v24, %v3642_v26  ;;  %v2479_v34 = vcombine.low %v3651_v29, %v3658_v31  ;;  %v3004_v36 = vld [vmem:[#allocation3] sm:$0xff]   ;;  %v3005_v47 = vld [vmem:[#allocation3 + $0x8] sm:$0xff]  }
  0x88   : > { %v2476_v35 = vcombine.low %v3639_v25, %v3645_v27  ;;  %v2474_v41 = vcombine.low %v3636_v24, %v3642_v26  ;;  %v2472_v43 = vcombine.high %v3624_v20, %v3630_v22  ;;  %v2473_v38 = vcombine.low %v3627_v21, %v3633_v23  ;;  %2723 = vmatprep.mubr.bf16.mxu1 %v3004_v36 }
  0x89   : > { %630 = vmatprep.subr.bf16.mxu0 %v2478_v37  ;;  %2707 = vmatprep.subr.bf16.mxu1 %v2479_v34  ;;  %v3328_v45 = vmov 0   ;;  %v2471_v37 = vcombine.low %v3624_v20, %v3630_v22 }
  0x8a   : > { %631 = vmatpush1.bf16.msra.mxu0 %v2477_v39  ;;  %2708 = vmatpush3.bf16.msra.mxu1 %v2479_v34  ;;  %v2470_v34 = vcombine.low %v3615_v17, %v3621_v19  ;;  %v2468_v39 = vcombine.low %v3612_v16, %v3618_v18 }
  0x8b   : > { %632 = vmatprep.subr.bf16.mxu0 %v2475_v32  ;;  %2709 = vmatprep.subr.bf16.mxu1 %v2476_v35  ;;  %v2469_v32 = vcombine.high %v3612_v16, %v3618_v18 }
  0x8c   : > { %662 = vmatprep.mubr.bf16.mxu0 %v3328_v45 }
  0x8e   : > { %633 = vmatpush1.bf16.msra.mxu0 %v2474_v41  ;;  %2710 = vmatpush3.bf16.msra.mxu1 %v2476_v35  ;;  %v2466_v41 = vcombine.high %v3600_v12, %v3606_v14  ;;  %v2465_v35 = vcombine.low %v3600_v12, %v3606_v14 }
  0x8f   : > { %634 = vmatprep.subr.bf16.mxu0 %v2472_v43  ;;  %2711 = vmatprep.subr.bf16.mxu1 %v2473_v38  ;;  %v2467_v43 = vcombine.low %v3603_v13, %v3609_v15 }
  0x92   : > { %635 = vmatpush1.bf16.msra.mxu0 %v2471_v37  ;;  %2712 = vmatpush3.bf16.msra.mxu1 %v2473_v38  ;;  %v2463_v37 = vcombine.high %v3588_v8, %v3594_v10  ;;  %v2462_v38 = vcombine.low %v3588_v8, %v3594_v10 }
  0x93   : > { %636 = vmatprep.subr.bf16.mxu0 %v2469_v32  ;;  %2713 = vmatprep.subr.bf16.mxu1 %v2470_v34  ;;  %v2464_v32 = vcombine.low %v3591_v9, %v3597_v11 }
  0x96   : > { %637 = vmatpush1.bf16.msra.mxu0 %v2468_v39  ;;  %2714 = vmatpush3.bf16.msra.mxu1 %v2470_v34  ;;  %v2460_v39 = vcombine.high %v3576_v4, %v3582_v6  ;;  %v2459_v34 = vcombine.low %v3576_v4, %v3582_v6 }
  0x97   : > { %638 = vmatprep.subr.bf16.mxu0 %v2466_v41  ;;  %2715 = vmatprep.subr.bf16.mxu1 %v2467_v43  ;;  %v2461_v41 = vcombine.low %v3579_v5, %v3585_v7 }
  0x9a   : > { %639 = vmatpush1.bf16.msra.mxu0 %v2465_v35  ;;  %2716 = vmatpush3.bf16.msra.mxu1 %v2467_v43  ;;  %v2457_v35 = vcombine.high %v3564_v0, %v3570_v2  ;;  %v2456_v43 = vcombine.low %v3564_v0, %v3570_v2 }
  0x9b   : > { %640 = vmatprep.subr.bf16.mxu0 %v2463_v37  ;;  %2717 = vmatprep.subr.bf16.mxu1 %v2464_v32  ;;  %v2458_v37 = vcombine.low %v3567_v1, %v3573_v3 }
  0x9e   : > { %641 = vmatpush1.bf16.msra.mxu0 %v2462_v38  ;;  %2718 = vmatpush3.bf16.msra.mxu1 %v2464_v32  ;;  %v3006_v38 = vld [vmem:[#allocation3 + $0x10] sm:$0xff]   ;;  %v3007_v32 = vld [vmem:[#allocation3 + $0x18] sm:$0xff]  }
  0x9f   : > { %642 = vmatprep.subr.bf16.mxu0 %v2460_v39  ;;  %2719 = vmatprep.subr.bf16.mxu1 %v2461_v41 }
  0xa2   : > { %643 = vmatpush1.bf16.msra.mxu0 %v2459_v34  ;;  %2720 = vmatpush3.bf16.msra.mxu1 %v2461_v41 }
  0xa3   : > { %644 = vmatprep.subr.bf16.mxu0 %v2457_v35  ;;  %2721 = vmatprep.subr.bf16.mxu1 %v2458_v37 }
  0xa6   : > { %645 = vmatpush1.bf16.msra.mxu0 %v2456_v43  ;;  %2722 = vmatpush3.bf16.msra.mxu1 %v2458_v37 }
  0xa9   : > { %663 = vmatmul.mubr.bf16.vlgmr.msra.gmra.mxu0 %v3004_v36  ;;  %2724 = vmatmul.mubr.bf16.vlgmr.msra.gmra.mxu1 %v3005_v47 }
  0xaa   : > { %672 = vmatprep.mubr.bf16.mxu0 %v3328_v45  ;;  %2727 = vmatprep.mubr.bf16.mxu1 %v3006_v38 }
  0xb1   : > { %673 = vmatmul.mubr.bf16.gmra.mxu0 %v3005_v47  ;;  %2728 = vmatmul.mubr.bf16.gmra.mxu1 %v3007_v32 }
  0xb2   : > { %682 = vmatprep.mubr.bf16.mxu0 %v3328_v45 }
  0xb9   : > { %683 = vmatmul.mubr.bf16.gmra.mxu0 %v3006_v38 }
  0xba   : > { %692 = vmatprep.mubr.bf16.mxu0 %v3328_v45 }
  0xc1   : > { %693 = vmatmul.mubr.bf16.gmra.mxu0 %v3007_v32 }
 0x169   : > { %v664_v39 = vpop.f32.mrf.mxu0  ;;  %v2725_v34 = vpop.f32.mrf.mxu1 }
 0x16a   : > { %v2593_v41 = vpack.c.bf16 %v2725_v34, %v2725_v34 }
 0x16b   : > { %v666_v35 = vpop.f32.mrf.mxu0  ;;  %v737_v43 = vpop.f32.mrf.mxu1 }
 0x16c   : > { %v2588_v40 = vpack.c.bf16 %v666_v35, %v664_v39  ;;  %853 = vst [vmem:[#allocation2 + $0x20] sm:$0xf] %v2593_v41  ;;  %v2589_v42 = vpack.c.bf16 %v737_v43, %v737_v43 }
 0x16d   : > { %v668_v37 = vpop.f32.mrf.mxu0  ;;  %v2726_v36 = vpop.f32.mrf.mxu1 }
 0x16e   : > { %848 = vst [vmem:[#allocation2] sm:$0xff] %v2588_v40  ;;  %849 = vst [vmem:[#allocation2 + $0x8] sm:$0xf] %v2589_v42  ;;  %v2595_v51 = vpack.c.bf16 %v2726_v36, %v2726_v36 }
 0x16f   : > { %v670_v49 = vpop.f32.mrf.mxu0  ;;  %v740_v44 = vpop.f32.mrf.mxu1 }
 0x170   : > { %v2590_v47 = vpack.c.bf16 %v670_v49, %v668_v37  ;;  %855 = vst [vmem:[#allocation2 + $0x2c] sm:$0xf] %v2595_v51  ;;  %v2591_v45 = vpack.c.bf16 %v740_v44, %v740_v44 }
 0x171   : > { %v674_v46 = vpop.f32.mrf.mxu0  ;;  %v2729_v38 = vpop.f32.mrf.mxu1 }
 0x172   : > { %850 = vst [vmem:[#allocation2 + $0xc] sm:$0xff] %v2590_v47  ;;  %851 = vst [vmem:[#allocation2 + $0x14] sm:$0xf] %v2591_v45  ;;  %v2601_v34 = vpack.c.bf16 %v2729_v38, %v2729_v38 }
 0x173   : > { %v676_v32 = vpop.f32.mrf.mxu0  ;;  %v753_v35 = vpop.f32.mrf.mxu1 }
 0x174   : > { %v2592_v39 = vpack.c.bf16 %v676_v32, %v674_v46  ;;  %861 = vst [vmem:[#allocation2 + $0x50] sm:$0xf] %v2601_v34  ;;  %v2597_v41 = vpack.c.bf16 %v753_v35, %v753_v35 }
 0x175   : > { %v678_v33 = vpop.f32.mrf.mxu0  ;;  %v2730_v40 = vpop.f32.mrf.mxu1 }
 0x176   : > { %852 = vst [vmem:[#allocation2 + $0x18] sm:$0xff] %v2592_v39  ;;  %857 = vst [vmem:[#allocation2 + $0x38] sm:$0xf] %v2597_v41  ;;  %v2603_v42 = vpack.c.bf16 %v2730_v40, %v2730_v40 }
 0x177   : > { %v680_v43 = vpop.f32.mrf.mxu0  ;;  %v756_v37 = vpop.f32.mrf.mxu1 }
 0x178   : > { %v2594_v49 = vpack.c.bf16 %v680_v43, %v678_v33  ;;  %863 = vst [vmem:[#allocation2 + $0x5c] sm:$0xf] %v2603_v42  ;;  %v2599_v44 = vpack.c.bf16 %v756_v37, %v756_v37 }
 0x179   : > { %v684_v36 = vpop.f32.mrf.mxu0 }
 0x17a   : > { %854 = vst [vmem:[#allocation2 + $0x24] sm:$0xff] %v2594_v49  ;;  %859 = vst [vmem:[#allocation2 + $0x44] sm:$0xf] %v2599_v44 }
 0x17b   : > { %v686_v51 = vpop.f32.mrf.mxu0 }
 0x17c   : > { %v2596_v47 = vpack.c.bf16 %v686_v51, %v684_v36 }
 0x17d   : > { %v688_v45 = vpop.f32.mrf.mxu0 }
 0x17e   : > { %856 = vst [vmem:[#allocation2 + $0x30] sm:$0xff] %v2596_v47 }
 0x17f   : > { %v690_v46 = vpop.f32.mrf.mxu0 }
 0x180   : > { %v2598_v38 = vpack.c.bf16 %v690_v46, %v688_v45 }
 0x181   : > { %v694_v32 = vpop.f32.mrf.mxu0 }
 0x182   : > { %858 = vst [vmem:[#allocation2 + $0x3c] sm:$0xff] %v2598_v38 }
 0x183   : > { %v696_v34 = vpop.f32.mrf.mxu0 }
 0x184   : > { %v2600_v39 = vpack.c.bf16 %v696_v34, %v694_v32 }
 0x185   : > { %v698_v35 = vpop.f32.mrf.mxu0 }
 0x186   : > { %860 = vst [vmem:[#allocation2 + $0x48] sm:$0xff] %v2600_v39 }
 0x187   : > { %v700_v41 = vpop.f32.mrf.mxu0 }
 0x188   : > { %v2602_v33 = vpack.c.bf16 %v700_v41, %v698_v35 }
 0x18a   : > { %862 = vst [vmem:[#allocation2 + $0x54] sm:$0xff] %v2602_v33 }
 0x18b PF: > { %p2496_p11 = scmp.eq.s32.totalorder %s3310_s24, 0 }
 0x18d   : > { %867 = sbr.rel (%p2496_p11) target bundleno = 662 (0x296), region = 64 }
 0x192   : > { %v2523_v40 = vcombine.high %v3648_v28, %v3655_v30  ;;  %v2522_v43 = vcombine.low %v3648_v28, %v3655_v30  ;;  %v2520_v42 = vcombine.high %v3636_v24, %v3642_v26  ;;  %v2524_v49 = vcombine.low %v3651_v29, %v3658_v31  ;;  %v3008_v28 = vld [vmem:[#allocation11] sm:$0xff]  }
 0x193   : > { %v2521_v37 = vcombine.low %v3639_v25, %v3645_v27  ;;  %v2519_v36 = vcombine.low %v3636_v24, %v3642_v26  ;;  %v2517_v44 = vcombine.high %v3624_v20, %v3630_v22  ;;  %v2518_v30 = vcombine.low %v3627_v21, %v3633_v23  ;;  %2747 = vmatprep.mubr.bf16.mxu1 %v3008_v28 }
 0x194   : > { %1028 = vmatprep.subr.bf16.mxu0 %v2523_v40  ;;  %2731 = vmatprep.subr.bf16.mxu1 %v2524_v49  ;;  %v3329_v29 = vmov 0   ;;  %v2516_v25 = vcombine.low %v3624_v20, %v3630_v22  ;;  %v2514_v24 = vcombine.high %v3612_v16, %v3618_v18  ;;  %v2515_v26 = vcombine.low %v3615_v17, %v3621_v19 }
 0x195   : > { %1029 = vmatpush1.bf16.msra.mxu0 %v2522_v43  ;;  %2732 = vmatpush3.bf16.msra.mxu1 %v2524_v49  ;;  %v2513_v21 = vcombine.low %v3612_v16, %v3618_v18  ;;  %v2511_v23 = vcombine.high %v3600_v12, %v3606_v14  ;;  %v2512_v20 = vcombine.low %v3603_v13, %v3609_v15 }
 0x196   : > { %1030 = vmatprep.subr.bf16.mxu0 %v2520_v42  ;;  %2733 = vmatprep.subr.bf16.mxu1 %v2521_v37  ;;  %v2510_v22 = vcombine.low %v3600_v12, %v3606_v14  ;;  %v2508_v17 = vcombine.high %v3588_v8, %v3594_v10  ;;  %v2509_v16 = vcombine.low %v3591_v9, %v3597_v11 }
 0x197   : > { %1060 = vmatprep.mubr.bf16.mxu0 %v3329_v29  ;;  %v2507_v18 = vcombine.low %v3588_v8, %v3594_v10  ;;  %v2505_v13 = vcombine.high %v3576_v4, %v3582_v6  ;;  %v2506_v12 = vcombine.low %v3579_v5, %v3585_v7  ;;  %v2504_v14 = vcombine.low %v3576_v4, %v3582_v6  ;;  %v3010_v5 = vld [vmem:[#allocation11 + $0x10] sm:$0xff]   ;;  %v3009_v4 = vld [vmem:[#allocation11 + $0x8] sm:$0xff]   ;;  %v3011_v6 = vld [vmem:[#allocation11 + $0x18] sm:$0xff]  }
 0x198   : > { %v2502_v9 = vcombine.high %v3564_v0, %v3570_v2  ;;  %v2503_v8 = vcombine.low %v3567_v1, %v3573_v3  ;;  %v2501_v10 = vcombine.low %v3564_v0, %v3570_v2 }
 0x199   : > { %1031 = vmatpush1.bf16.msra.mxu0 %v2519_v36  ;;  %2734 = vmatpush3.bf16.msra.mxu1 %v2521_v37 }
 0x19a   : > { %1032 = vmatprep.subr.bf16.mxu0 %v2517_v44  ;;  %2735 = vmatprep.subr.bf16.mxu1 %v2518_v30 }
 0x19d   : > { %1033 = vmatpush1.bf16.msra.mxu0 %v2516_v25  ;;  %2736 = vmatpush3.bf16.msra.mxu1 %v2518_v30 }
 0x19e   : > { %1034 = vmatprep.subr.bf16.mxu0 %v2514_v24  ;;  %2737 = vmatprep.subr.bf16.mxu1 %v2515_v26 }
 0x1a1   : > { %1035 = vmatpush1.bf16.msra.mxu0 %v2513_v21  ;;  %2738 = vmatpush3.bf16.msra.mxu1 %v2515_v26 }
 0x1a2   : > { %1036 = vmatprep.subr.bf16.mxu0 %v2511_v23  ;;  %2739 = vmatprep.subr.bf16.mxu1 %v2512_v20 }
 0x1a5   : > { %1037 = vmatpush1.bf16.msra.mxu0 %v2510_v22  ;;  %2740 = vmatpush3.bf16.msra.mxu1 %v2512_v20 }
 0x1a6   : > { %1038 = vmatprep.subr.bf16.mxu0 %v2508_v17  ;;  %2741 = vmatprep.subr.bf16.mxu1 %v2509_v16 }
 0x1a9   : > { %1039 = vmatpush1.bf16.msra.mxu0 %v2507_v18  ;;  %2742 = vmatpush3.bf16.msra.mxu1 %v2509_v16 }
 0x1aa   : > { %1040 = vmatprep.subr.bf16.mxu0 %v2505_v13  ;;  %2743 = vmatprep.subr.bf16.mxu1 %v2506_v12 }
 0x1ad   : > { %1041 = vmatpush1.bf16.msra.mxu0 %v2504_v14  ;;  %2744 = vmatpush3.bf16.msra.mxu1 %v2506_v12 }
 0x1ae   : > { %1042 = vmatprep.subr.bf16.mxu0 %v2502_v9  ;;  %2745 = vmatprep.subr.bf16.mxu1 %v2503_v8 }
 0x1b1   : > { %1043 = vmatpush1.bf16.msra.mxu0 %v2501_v10  ;;  %2746 = vmatpush3.bf16.msra.mxu1 %v2503_v8 }
 0x1b4   : > { %1061 = vmatmul.mubr.bf16.vlgmr.msra.gmra.mxu0 %v3008_v28  ;;  %2748 = vmatmul.mubr.bf16.vlgmr.msra.gmra.mxu1 %v3009_v4 }
 0x1b5   : > { %1070 = vmatprep.mubr.bf16.mxu0 %v3329_v29  ;;  %2751 = vmatprep.mubr.bf16.mxu1 %v3010_v5 }
 0x1bc   : > { %1071 = vmatmul.mubr.bf16.gmra.mxu0 %v3009_v4  ;;  %2752 = vmatmul.mubr.bf16.gmra.mxu1 %v3011_v6 }
 0x1bd   : > { %1080 = vmatprep.mubr.bf16.mxu0 %v3329_v29 }
 0x1c4   : > { %1081 = vmatmul.mubr.bf16.gmra.mxu0 %v3010_v5 }
 0x1c5   : > { %1090 = vmatprep.mubr.bf16.mxu0 %v3329_v29 }
 0x1cc   : > { %1091 = vmatmul.mubr.bf16.gmra.mxu0 %v3011_v6 }
 0x274   : > { %v1062_v1 = vpop.f32.mrf.mxu0  ;;  %v2749_v0 = vpop.f32.mrf.mxu1 }
 0x275   : > { %v2609_v3 = vpack.c.bf16 %v2749_v0, %v2749_v0 }
 0x276   : > { %v1064_v2 = vpop.f32.mrf.mxu0  ;;  %v1135_v11 = vpop.f32.mrf.mxu1 }
 0x277   : > { %v2604_v7 = vpack.c.bf16 %v1064_v2, %v1062_v1  ;;  %1251 = vst [vmem:[#allocation2 + $0x20] sm:$0xf] %v2609_v3  ;;  %v2605_v19 = vpack.c.bf16 %v1135_v11, %v1135_v11 }
 0x278   : > { %v1066_v15 = vpop.f32.mrf.mxu0  ;;  %v2750_v27 = vpop.f32.mrf.mxu1 }
 0x279   : > { %1246 = vst [vmem:[#allocation2] sm:$0xff] %v2604_v7  ;;  %1247 = vst [vmem:[#allocation2 + $0x8] sm:$0xf] %v2605_v19  ;;  %v2611_v51 = vpack.c.bf16 %v2750_v27, %v2750_v27 }
 0x27a   : > { %v1068_v31 = vpop.f32.mrf.mxu0  ;;  %v1138_v45 = vpop.f32.mrf.mxu1 }
 0x27b   : > { %v2606_v47 = vpack.c.bf16 %v1068_v31, %v1066_v15  ;;  %1253 = vst [vmem:[#allocation2 + $0x2c] sm:$0xf] %v2611_v51  ;;  %v2607_v38 = vpack.c.bf16 %v1138_v45, %v1138_v45 }
 0x27c   : > { %v1072_v46 = vpop.f32.mrf.mxu0  ;;  %v2753_v32 = vpop.f32.mrf.mxu1 }
 0x27d   : > { %1248 = vst [vmem:[#allocation2 + $0xc] sm:$0xff] %v2606_v47  ;;  %1249 = vst [vmem:[#allocation2 + $0x14] sm:$0xf] %v2607_v38  ;;  %v2617_v39 = vpack.c.bf16 %v2753_v32, %v2753_v32 }
 0x27e   : > { %v1074_v34 = vpop.f32.mrf.mxu0  ;;  %v1151_v41 = vpop.f32.mrf.mxu1 }
 0x27f   : > { %v2608_v35 = vpack.c.bf16 %v1074_v34, %v1072_v46  ;;  %1259 = vst [vmem:[#allocation2 + $0x50] sm:$0xf] %v2617_v39  ;;  %v2613_v40 = vpack.c.bf16 %v1151_v41, %v1151_v41 }
 0x280   : > { %v1076_v33 = vpop.f32.mrf.mxu0  ;;  %v2754_v43 = vpop.f32.mrf.mxu1 }
 0x281   : > { %1250 = vst [vmem:[#allocation2 + $0x18] sm:$0xff] %v2608_v35  ;;  %1255 = vst [vmem:[#allocation2 + $0x38] sm:$0xf] %v2613_v40  ;;  %v2619_v49 = vpack.c.bf16 %v2754_v43, %v2754_v43 }
 0x282   : > { %v1078_v42 = vpop.f32.mrf.mxu0  ;;  %v1154_v36 = vpop.f32.mrf.mxu1 }
 0x283   : > { %v2610_v37 = vpack.c.bf16 %v1078_v42, %v1076_v33  ;;  %1261 = vst [vmem:[#allocation2 + $0x5c] sm:$0xf] %v2619_v49  ;;  %v2615_v28 = vpack.c.bf16 %v1154_v36, %v1154_v36 }
 0x284   : > { %v1082_v44 = vpop.f32.mrf.mxu0 }
 0x285   : > { %1252 = vst [vmem:[#allocation2 + $0x24] sm:$0xff] %v2610_v37  ;;  %1257 = vst [vmem:[#allocation2 + $0x44] sm:$0xf] %v2615_v28 }
 0x286   : > { %v1084_v30 = vpop.f32.mrf.mxu0 }
 0x287   : > { %v2612_v29 = vpack.c.bf16 %v1084_v30, %v1082_v44 }
 0x288   : > { %v1086_v25 = vpop.f32.mrf.mxu0 }
 0x289   : > { %1254 = vst [vmem:[#allocation2 + $0x30] sm:$0xff] %v2612_v29 }
 0x28a   : > { %v1088_v24 = vpop.f32.mrf.mxu0 }
 0x28b   : > { %v2614_v26 = vpack.c.bf16 %v1088_v24, %v1086_v25 }
 0x28c   : > { %v1092_v21 = vpop.f32.mrf.mxu0 }
 0x28d   : > { %1256 = vst [vmem:[#allocation2 + $0x3c] sm:$0xff] %v2614_v26 }
 0x28e   : > { %v1094_v23 = vpop.f32.mrf.mxu0 }
 0x28f   : > { %v2616_v20 = vpack.c.bf16 %v1094_v23, %v1092_v21 }
 0x290   : > { %v1096_v22 = vpop.f32.mrf.mxu0 }
 0x291   : > { %1258 = vst [vmem:[#allocation2 + $0x48] sm:$0xff] %v2616_v20 }
 0x292   : > { %v1098_v17 = vpop.f32.mrf.mxu0 }
 0x293   : > { %v2618_v16 = vpack.c.bf16 %v1098_v17, %v1096_v22 }
 0x295   : > { %1260 = vst [vmem:[#allocation2 + $0x54] sm:$0xff] %v2618_v16 }
 0x296 PF: > { %v3869_v18 = vcombine.high %v3749_v60, %v3755_v62  ;;  %v3873_v13 = vcombine.low %v3749_v60, %v3755_v62  ;;  %v3877_v12 = vcombine.high %v3737_v56, %v3743_v58  ;;  %v3883_v14 = vcombine.low %v3737_v56, %v3743_v58  ;;  %v4434_v6 = vld [vmem:[#allocation41_spill] sm:$0xff]  ;;  %v4436_v2 = vld [vmem:[#allocation35_spill] sm:$0xff]  ;;  %v4437_v11 = vld [vmem:[#allocation40_spill] sm:$0xff]  ;;  %s2584_s1 = sshll.u32 %s3310_s24, 7  ;;  %s2280_s28 = sshll.u32 %s3767_s2, 4  ;;  %s4303_s28 = int_to_ptr.vmem [resolvable:$true] %s2280_s28 }
 0x297   : > { %v3887_v9 = vcombine.low %v3752_v61, %v3758_v63  ;;  %v3892_v60 = vcombine.high %v3722_v52, %v3731_v54  ;;  %v3330_v62 = vmov 0.0   ;;  %v3331_v8 = vmov 0   ;;  %v1262_v61 = vld [vmem:[#allocation2] sm:$0xff]  ;;  %v4440_v31 = vld [vmem:[#allocation31_spill] sm:$0xff]  ;;  %v4441_v45 = vld [vmem:[#allocation38_spill] sm:$0xff]  ;;  %s3333_s12 = smov [#allocation11]   ;;  %s4301_s26 = scalar_lea.hbm %s4374_s6, %s2584_s1 }
 0x298   : > { %1444 = vmatprep.subr.bf16.mxu0 %v3869_v18  ;;  %2755 = vmatprep.subr.bf16.mxu1 %v3330_v62  ;;  %v3899_v56 = vcombine.low %v3740_v57, %v3746_v59  ;;  %v1268_v58 = vlaneseq  ;;  %v3905_v63 = vcombine.low %v3722_v52, %v3731_v54  ;;  %v3912_v5 = vcombine.high %v3710_v48, %v3716_v50  ;;  %v4435_v0 = vld [vmem:[#allocation37_spill] sm:$0xff]  ;;  %v4442_v46 = vld [vmem:[#allocation36_spill] sm:$0xff]  ;;  %v4444_v39 = vld [vmem:[#allocation27_spill] sm:$0xff]  ;;  %s2263_s9 = sshll.u32 %s3333_s12, 4  ;;  %s2251_s24 = scalar_lea.sflag [#allocation13], %s3543_s0  ;;  %s4305_s9 = int_to_ptr.vmem [resolvable:$true] %s2263_s9 }
 0x299   : > { %1445 = vmatpush1.bf16.msra.mxu0 %v3873_v13  ;;  %2756 = vmatpush3.bf16.msra.mxu1 %v3887_v9  ;;  %vm3332_vm0 = vmmov 0   ;;  %v1264_v57 = vunpack.c.l.bf16 %v1262_v61  ;;  %v3921_v54 = vcombine.low %v3725_v53, %v3734_v55  ;;  %v3927_v4 = vcombine.low %v3710_v48, %v3716_v50  ;;  %v4438_v48 = vld [vmem:[#allocation39_spill] sm:$0xff]  ;;  %v4439_v27 = vld [vmem:[#allocation33_spill] sm:$0xff]  ;;  %v4445_v33 = vld [vmem:[#allocation34_spill] sm:$0xff]  ;;  %s3202_s7 = scalar_lea.vmem %s4303_s28, 128  ;;  %s3334_s14 = smov [#allocation12]  }
 0x29a   : > { %1446 = vmatprep.subr.bf16.mxu0 %v3877_v12  ;;  %1476 = vmatprep.mubr.bf16.mxu0 %v3331_v8  ;;  %v3907_v10 = vshrl.u32 %v1268_v58, 7  ;;  %v3935_v3 = vcombine.high %v4436_v2, %v4435_v0  ;;  %v1265_v7 = vunpack.c.h.bf16 %v1262_v61  ;;  %v3944_v50 = vcombine.low %v4438_v48, %v4437_v11  ;;  %v4443_v34 = vld [vmem:[#allocation29_spill] sm:$0xff]  ;;  %v4446_v40 = vld [vmem:[#allocation32_spill] sm:$0xff]  ;;  %v4448_v37 = vld [vmem:[#allocation23_spill] sm:$0xff]  ;;  %p3203_p2 = scmp.ne.s32.totalorder %s4303_s28, %s3202_s7  ;;  %s3206_s17 = sshll.u32 %s3334_s14, 4  ;;  %s3207_s17 = int_to_ptr.vmem [resolvable:$false] %s3206_s17 }
 0x29b   : > { %2757 = vmatprep.subr.bf16.mxu1 %v3330_v62  ;;  %2771 = vmatprep.mubr.msk.bf16.mxu1 %vm3332_vm0, %v3330_v62  ;;  %v3950_v15 = vcombine.low %v4436_v2, %v4435_v0  ;;  %v3955_v51 = vcombine.high %v4440_v31, %v4439_v27  ;;  %v3961_v38 = vcombine.low %v4442_v46, %v4441_v45  ;;  %v4447_v49 = vld [vmem:[#allocation25_spill] sm:$0xff]  ;;  %v4449_v44 = vld [vmem:[#allocation30_spill] sm:$0xff]  ;;  %v4450_v28 = vld [vmem:[#allocation28_spill] sm:$0xff]  ;;  %s3208_s29 = scalar_lea.vmem %s3207_s17, 256  ;;  %p3209_p4 = scmp.lt.s32.totalorder %s4303_s28, %s3207_s17 }
 0x29c   : > { %v1270_v59 = vsub.s32 0, %v3907_v10  ;;  %v1274_v52 = vsub.s32 1, %v3907_v10  ;;  %v3967_v32 = vcombine.low %v4440_v31, %v4439_v27  ;;  %v3972_v35 = vcombine.high %v4444_v39, %v4443_v34  ;;  %v4451_v25 = vld [vmem:[#allocation26_spill] sm:$0xff]  ;;  %v4452_v24 = vld [vmem:[#allocation24_spill] sm:$0xff]  ;;  %p3204_p3 = pnand %p3203_p2, %p3469_p12  ;;  %p3210_p9 = scmp.lt.s32.totalorder %s3208_s29, %s3202_s7 }
 0x29d   : > { %1447 = vmatpush1.bf16.msra.mxu0 %v3883_v14  ;;  %2758 = vmatpush3.bf16.msra.mxu1 %v3899_v56  ;;  %v3977_v43 = vcombine.low %v4446_v40, %v4445_v33  ;;  %v3983_v42 = vcombine.low %v4444_v39, %v4443_v34  ;;  %v3988_v36 = vcombine.high %v4448_v37, %v4447_v49  ;;  %v1278_v20 = vsub.s32 2, %v3907_v10  ;;  %v4013_v17 = vld [vmem:[#allocation2 + $0x8] ss:$12 sps:$4 sm:$0xff]   ;;  %v1526_v27 = vld [vmem:[#allocation2 + $0xc] sm:$0xff] }
 0x29e   : > { %1448 = vmatprep.subr.bf16.mxu0 %v3892_v60  ;;  %2759 = vmatprep.subr.bf16.mxu1 %v3330_v62  ;;  %v3930_v1 = vrot.slane %v4434_v6, %v1270_v59  ;;  %v3938_v53 = vrot.slane %v4434_v6, %v1274_v52  ;;  %v3993_v30 = vcombine.low %v4450_v28, %v4449_v44  ;;  %v1266_v16 = vunpack.c.l.bf16 %v4013_v17  ;;  %v4453_v52 = vld [vmem:[#allocation42_spill] sm:$0xff]  ;;  %p3205_p1 = pneg %p3204_p3  ;;  %p3211_p10 = por %p3210_p9, %p3209_p4 }
 0x29f   : > { %v3999_v29 = vcombine.low %v4448_v37, %v4447_v49  ;;  %v4005_v26 = vcombine.low %v4452_v24, %v4451_v25  ;;  %v4017_v58 = vrot.slane %v4434_v6, %v1278_v20  ;;  %v1528_v31 = vunpack.c.l.bf16 %v1526_v27 }
 0x2a0   : > { %v1283_v55 = vadd.f32 %v3930_v1, %v1264_v57  ;;  %v1284_v47 = vadd.f32 %v3938_v53, %v1265_v7  ;;  %v1529_v45 = vunpack.c.h.bf16 %v1526_v27  ;;  %p3212_p8 = pnand %p3211_p10, %p3205_p1 }
 0x2a1   : > { %1449 = vmatpush1.bf16.msra.mxu0 %v3905_v63  ;;  %2760 = vmatpush3.bf16.msra.mxu1 %v3921_v54  ;;  %v1285_v57 = vadd.f32 %v4017_v58, %v1266_v16  ;;  %v1530_v16 = vunpack.c.h.bf16 %v4013_v17 }
 0x2a2   : > { %1450 = vmatprep.subr.bf16.mxu0 %v3912_v5  ;;  %2761 = vmatprep.subr.bf16.mxu1 %v3330_v62  ;;  %v2541_v19 = vmul.f32 -1.442695, %v1283_v55  ;;  %v2542_v41 = vmul.f32 -1.442695, %v1284_v47  ;;  %v1531_v47 = vadd.f32 %v1528_v31, %v3930_v1  ;;  %v1532_v49 = vadd.f32 %v1529_v45, %v3938_v53 }
 0x2a4   : > { %3012 = vpow2.f32 %v2541_v19 }
 0x2a5   : > { %1451 = vmatpush1.bf16.msra.mxu0 %v3927_v4  ;;  %2762 = vmatpush3.bf16.msra.mxu1 %v3944_v50  ;;  %3014 = vpow2.f32 %v2542_v41 }
 0x2a6   : > { %1452 = vmatprep.subr.bf16.mxu0 %v3935_v3  ;;  %2763 = vmatprep.subr.bf16.mxu1 %v3330_v62 }
 0x2a9   : > { %1453 = vmatpush1.bf16.msra.mxu0 %v3950_v15  ;;  %2764 = vmatpush3.bf16.msra.mxu1 %v3961_v38 }
 0x2aa   : > { %1454 = vmatprep.subr.bf16.mxu0 %v3955_v51  ;;  %2765 = vmatprep.subr.bf16.mxu1 %v3330_v62 }
 0x2ad   : > { %1455 = vmatpush1.bf16.msra.mxu0 %v3967_v32  ;;  %2766 = vmatpush3.bf16.msra.mxu1 %v3977_v43 }
 0x2ae   : > { %1456 = vmatprep.subr.bf16.mxu0 %v3972_v35  ;;  %2767 = vmatprep.subr.bf16.mxu1 %v3330_v62 }
 0x2b1   : > { %1457 = vmatpush1.bf16.msra.mxu0 %v3983_v42  ;;  %2768 = vmatpush3.bf16.msra.mxu1 %v3993_v30  ;;  %v3013_v21 = vpop.eup %3012 }
 0x2b2   : > { %1458 = vmatprep.subr.bf16.mxu0 %v3988_v36  ;;  %2769 = vmatprep.subr.bf16.mxu1 %v3330_v62  ;;  %v1290_v23 = vadd.f32 1.0, %v3013_v21  ;;  %v3015_v22 = vpop.eup %3014 }
 0x2b3   : > { %v1297_v61 = vadd.f32 1.0, %v3015_v22 }
 0x2b4   : > { %3016 = vrcp.f32 %v1290_v23 }
 0x2b5   : > { %1459 = vmatpush1.bf16.msra.mxu0 %v3999_v29  ;;  %2770 = vmatpush3.bf16.msra.mxu1 %v4005_v26  ;;  %3018 = vrcp.f32 %v1297_v61 }
 0x2b6   : > { %1559 = vmatprep.subr.bf16.mxu0 %v3869_v18  ;;  %2775 = vmatprep.subr.bf16.mxu1 %v3330_v62 }
 0x2c1   : > { %v3017_v59 = vpop.eup %3016 }
 0x2c2   : > { %v1307_v0 = vmul.f32 %v3017_v59, %v4453_v52  ;;  %v3019_v7 = vpop.eup %3018  ;;  %v1533_v59 = vadd.f32 %v1530_v16, %v4017_v58 }
 0x2c3   : > { %v1310_v55 = vsub.f32 1.0, %v3019_v7  ;;  %v1312_v10 = vmul.f32 0.0, %v3019_v7 }
 0x2c4   : > { %v1308_v2 = vadd.f32 %v1307_v0, %v1285_v57 }
 0x2c6   : > { %3020 = vtanh.f32 %v1308_v2 }
 0x2d3   : > { %v3021_v11 = vpop.eup %3020 }
 0x2d4   : > { %v1311_v48 = vmul.f32 %v3021_v11, %v1310_v55 }
 0x2d6   : > { %v4021_v19 = vadd.f32 %v1312_v10, %v1311_v48 }
 0x2d8   : > { %v1314_v6 = vpack.c.bf16 %v4021_v19, %v4021_v19 }
 0x2da   : > { %1315 = vst [vmem:[#allocation11] sm:$0xf] %v1314_v6  ;;  %1477 = vmatmul.mubr.bf16.vlgmr.msra.gmra.mxu0 %v1314_v6  ;;  %2772 = vmatmul.mubr.bf16.vlgmr.msra.gmra.mxu1 %v1314_v6 }
 0x2db   : > { %1560 = vmatpush1.bf16.msra.mxu0 %v3873_v13  ;;  %2776 = vmatpush3.bf16.msra.mxu1 %v3887_v9 }
 0x2dc   : > { %1561 = vmatprep.subr.bf16.mxu0 %v3877_v12  ;;  %2777 = vmatprep.subr.bf16.mxu1 %v3330_v62 }
 0x2dd   : > { %1591 = vmatprep.mubr.bf16.mxu0 %v3331_v8  ;;  %2791 = vmatprep.mubr.msk.bf16.mxu1 %vm3332_vm0, %v3330_v62 }
 0x2df   : > { %1562 = vmatpush1.bf16.msra.mxu0 %v3883_v14  ;;  %2778 = vmatpush3.bf16.msra.mxu1 %v3899_v56 }
 0x2e0   : > { %1563 = vmatprep.subr.bf16.mxu0 %v3892_v60  ;;  %2779 = vmatprep.subr.bf16.mxu1 %v3330_v62 }
 0x2e3   : > { %1564 = vmatpush1.bf16.msra.mxu0 %v3905_v63  ;;  %2780 = vmatpush3.bf16.msra.mxu1 %v3921_v54 }
 0x2e4   : > { %1565 = vmatprep.subr.bf16.mxu0 %v3912_v5  ;;  %2781 = vmatprep.subr.bf16.mxu1 %v3330_v62 }
 0x2e7   : > { %1566 = vmatpush1.bf16.msra.mxu0 %v3927_v4  ;;  %2782 = vmatpush3.bf16.msra.mxu1 %v3944_v50 }
 0x2e8   : > { %1567 = vmatprep.subr.bf16.mxu0 %v3935_v3  ;;  %2783 = vmatprep.subr.bf16.mxu1 %v3330_v62 }
 0x2eb   : > { %1568 = vmatpush1.bf16.msra.mxu0 %v3950_v15  ;;  %2784 = vmatpush3.bf16.msra.mxu1 %v3961_v38 }
 0x2ec   : > { %1569 = vmatprep.subr.bf16.mxu0 %v3955_v51  ;;  %2785 = vmatprep.subr.bf16.mxu1 %v3330_v62 }
 0x2ef   : > { %1570 = vmatpush1.bf16.msra.mxu0 %v3967_v32  ;;  %2786 = vmatpush3.bf16.msra.mxu1 %v3977_v43 }
 0x2f0   : > { %1571 = vmatprep.subr.bf16.mxu0 %v3972_v35  ;;  %2787 = vmatprep.subr.bf16.mxu1 %v3330_v62 }
 0x2f3   : > { %1572 = vmatpush1.bf16.msra.mxu0 %v3983_v42  ;;  %2788 = vmatpush3.bf16.msra.mxu1 %v3993_v30 }
 0x2f4   : > { %1573 = vmatprep.subr.bf16.mxu0 %v3988_v36  ;;  %2789 = vmatprep.subr.bf16.mxu1 %v3330_v62 }
 0x2f7   : > { %1574 = vmatpush1.bf16.msra.mxu0 %v3999_v29  ;;  %2790 = vmatpush3.bf16.msra.mxu1 %v4005_v26 }
 0x2f8   : > { %1674 = vmatprep.subr.bf16.mxu0 %v3869_v18  ;;  %2795 = vmatprep.subr.bf16.mxu1 %v3330_v62 }
 0x39a   : > { %v1478_v46 = vpop.f32.mrf.mxu0  ;;  %v1519_v34 = vpop.f32.mrf.mxu1 }
 0x39b   : > { %v1534_v39 = vadd.f32 %v1531_v47, %v1478_v46  ;;  %v1548_v57 = vadd.f32 %v4453_v52, %v1519_v34 }
 0x39c   : > { %v1480_v41 = vpop.f32.mrf.mxu0  ;;  %v2773_v33 = vpop.f32.mrf.mxu1 }
 0x39d   : > { %v2568_v40 = vmul.f32 -1.442695, %v1534_v39  ;;  %v1541_v24 = vadd.f32 %v1532_v49, %v1480_v41 }
 0x39e   : > { %v1482_v37 = vpop.f32.mrf.mxu0  ;;  %v1522_v44 = vpop.f32.mrf.mxu1 }
 0x39f   : > { %3022 = vpow2.f32 %v2568_v40  ;;  %v2569_v21 = vmul.f32 -1.442695, %v1541_v24 }
 0x3a0   : > { %v1483_v28 = vpop.f32.mrf.mxu0  ;;  %v2774_v25 = vpop.f32.mrf.mxu1 }
 0x3a1   : > { %3024 = vpow2.f32 %v2569_v21 }
 0x3ac   : > { %v3023_v23 = vpop.eup %3022 }
 0x3ad   : > { %v1538_v20 = vadd.f32 1.0, %v3023_v23 }
 0x3ae   : > { %v3025_v22 = vpop.eup %3024 }
 0x3af   : > { %3026 = vrcp.f32 %v1538_v20  ;;  %v1545_v61 = vadd.f32 1.0, %v3025_v22  ;;  %v4107_v22 = vld [vmem:[#allocation2 + $0x20] ss:$12 sps:$4 sm:$0xff]  }
 0x3b1   : > { %3028 = vrcp.f32 %v1545_v61  ;;  %v1645_v61 = vunpack.c.l.bf16 %v4107_v22 }
 0x3bc   : > { %v3027_v0 = vpop.eup %3026 }
 0x3bd   : > { %v1549_v2 = vmul.f32 %v3027_v0, %v1548_v57 }
 0x3be   : > { %v3029_v55 = vpop.eup %3028 }
 0x3bf   : > { %v1550_v7 = vadd.f32 %v1549_v2, %v1533_v59  ;;  %v1552_v10 = vsub.f32 1.0, %v3029_v55  ;;  %v1554_v6 = vmul.f32 %v3029_v55, %v4021_v19  ;;  %v1641_v19 = vld [vmem:[#allocation2 + $0x18] sm:$0xff]  ;;  %v1648_v59 = vadd.f32 %v1645_v61, %v4017_v58 }
 0x3c0   : > { %v1643_v31 = vunpack.c.l.bf16 %v1641_v19  ;;  %v1644_v45 = vunpack.c.h.bf16 %v1641_v19 }
 0x3c1   : > { %3030 = vtanh.f32 %v1550_v7 }
 0x3c2   : > { %v1646_v47 = vadd.f32 %v1643_v31, %v3930_v1  ;;  %v1647_v49 = vadd.f32 %v1644_v45, %v3938_v53 }
 0x3ce   : > { %v3031_v11 = vpop.eup %3030 }
 0x3cf   : > { %v1553_v48 = vmul.f32 %v3031_v11, %v1552_v10 }
 0x3d1   : > { %v4066_v27 = vadd.f32 %v1554_v6, %v1553_v48 }
 0x3d3   : > { %v1556_v17 = vpack.c.bf16 %v4066_v27, %v4066_v27 }
 0x3d5   : > { %1558 = vst [vmem:[#allocation11 + $0x4] sm:$0xf] %v1556_v17  ;;  %1592 = vmatmul.mubr.bf16.vlgmr.msra.gmra.mxu0 %v1556_v17  ;;  %2792 = vmatmul.mubr.bf16.vlgmr.msra.gmra.mxu1 %v1556_v17 }
 0x3d6   : > { %1675 = vmatpush1.bf16.msra.mxu0 %v3873_v13  ;;  %2796 = vmatpush3.bf16.msra.mxu1 %v3887_v9 }
 0x3d7   : > { %1676 = vmatprep.subr.bf16.mxu0 %v3877_v12  ;;  %2797 = vmatprep.subr.bf16.mxu1 %v3330_v62 }
 0x3d8   : > { %1706 = vmatprep.mubr.bf16.mxu0 %v3331_v8  ;;  %2811 = vmatprep.mubr.msk.bf16.mxu1 %vm3332_vm0, %v3330_v62 }
 0x3da   : > { %1677 = vmatpush1.bf16.msra.mxu0 %v3883_v14  ;;  %2798 = vmatpush3.bf16.msra.mxu1 %v3899_v56 }
 0x3db   : > { %1678 = vmatprep.subr.bf16.mxu0 %v3892_v60  ;;  %2799 = vmatprep.subr.bf16.mxu1 %v3330_v62 }
 0x3de   : > { %1679 = vmatpush1.bf16.msra.mxu0 %v3905_v63  ;;  %2800 = vmatpush3.bf16.msra.mxu1 %v3921_v54 }
 0x3df   : > { %1680 = vmatprep.subr.bf16.mxu0 %v3912_v5  ;;  %2801 = vmatprep.subr.bf16.mxu1 %v3330_v62 }
 0x3e2   : > { %1681 = vmatpush1.bf16.msra.mxu0 %v3927_v4  ;;  %2802 = vmatpush3.bf16.msra.mxu1 %v3944_v50 }
 0x3e3   : > { %1682 = vmatprep.subr.bf16.mxu0 %v3935_v3  ;;  %2803 = vmatprep.subr.bf16.mxu1 %v3330_v62 }
 0x3e6   : > { %1683 = vmatpush1.bf16.msra.mxu0 %v3950_v15  ;;  %2804 = vmatpush3.bf16.msra.mxu1 %v3961_v38 }
 0x3e7   : > { %1684 = vmatprep.subr.bf16.mxu0 %v3955_v51  ;;  %2805 = vmatprep.subr.bf16.mxu1 %v3330_v62 }
 0x3ea   : > { %1685 = vmatpush1.bf16.msra.mxu0 %v3967_v32  ;;  %2806 = vmatpush3.bf16.msra.mxu1 %v3977_v43 }
 0x3eb   : > { %1686 = vmatprep.subr.bf16.mxu0 %v3972_v35  ;;  %2807 = vmatprep.subr.bf16.mxu1 %v3330_v62 }
 0x3ee   : > { %1687 = vmatpush1.bf16.msra.mxu0 %v3983_v42  ;;  %2808 = vmatpush3.bf16.msra.mxu1 %v3993_v30 }
 0x3ef   : > { %1688 = vmatprep.subr.bf16.mxu0 %v3988_v36  ;;  %2809 = vmatprep.subr.bf16.mxu1 %v3330_v62 }
 0x3f2   : > { %1689 = vmatpush1.bf16.msra.mxu0 %v3999_v29  ;;  %2810 = vmatpush3.bf16.msra.mxu1 %v4005_v26 }
 0x3f3   : > { %1789 = vmatprep.subr.bf16.mxu0 %v3869_v18  ;;  %2815 = vmatprep.subr.bf16.mxu1 %v3330_v62 }
 0x495   : > { %v1593_v46 = vpop.f32.mrf.mxu0  ;;  %v1634_v34 = vpop.f32.mrf.mxu1 }
 0x496   : > { %v1649_v39 = vadd.f32 %v1646_v47, %v1593_v46  ;;  %v1663_v0 = vadd.f32 %v4453_v52, %v1634_v34 }
 0x497   : > { %v1595_v41 = vpop.f32.mrf.mxu0  ;;  %v2793_v33 = vpop.f32.mrf.mxu1 }
 0x498   : > { %v2570_v40 = vmul.f32 -1.442695, %v1649_v39  ;;  %v1656_v24 = vadd.f32 %v1647_v49, %v1595_v41 }
 0x499   : > { %v1597_v37 = vpop.f32.mrf.mxu0  ;;  %v1637_v44 = vpop.f32.mrf.mxu1 }
 0x49a   : > { %3032 = vpow2.f32 %v2570_v40  ;;  %v2571_v21 = vmul.f32 -1.442695, %v1656_v24 }
 0x49b   : > { %v1598_v28 = vpop.f32.mrf.mxu0  ;;  %v2794_v25 = vpop.f32.mrf.mxu1 }
 0x49c   : > { %3034 = vpow2.f32 %v2571_v21 }
 0x4a7   : > { %v3033_v23 = vpop.eup %3032 }
 0x4a8   : > { %v1653_v20 = vadd.f32 1.0, %v3033_v23 }
 0x4a9   : > { %v3035_v16 = vpop.eup %3034 }
 0x4aa   : > { %3036 = vrcp.f32 %v1653_v20  ;;  %v1660_v57 = vadd.f32 1.0, %v3035_v16 }
 0x4ac   : > { %3038 = vrcp.f32 %v1660_v57  ;;  %v1760_v57 = vunpack.c.h.bf16 %v4107_v22 }
 0x4b7   : > { %v3037_v2 = vpop.eup %3036 }
 0x4b8   : > { %v1664_v7 = vmul.f32 %v3037_v2, %v1663_v0  ;;  %v1763_v0 = vadd.f32 %v1760_v57, %v4017_v58 }
 0x4b9   : > { %v3039_v10 = vpop.eup %3038 }
 0x4ba   : > { %v1665_v55 = vadd.f32 %v1664_v7, %v1648_v59  ;;  %v1667_v11 = vsub.f32 1.0, %v3039_v10  ;;  %v1669_v17 = vmul.f32 %v3039_v10, %v4066_v27  ;;  %v1756_v27 = vld [vmem:[#allocation2 + $0x24] sm:$0xff] }
 0x4bb   : > { %v1758_v47 = vunpack.c.l.bf16 %v1756_v27  ;;  %v1759_v46 = vunpack.c.h.bf16 %v1756_v27 }
 0x4bc   : > { %3040 = vtanh.f32 %v1665_v55 }
 0x4bd   : > { %v1761_v45 = vadd.f32 %v1758_v47, %v3930_v1  ;;  %v1762_v37 = vadd.f32 %v1759_v46, %v3938_v53 }
 0x4c9   : > { %v3041_v48 = vpop.eup %3040 }
 0x4ca   : > { %v1668_v6 = vmul.f32 %v3041_v48, %v1667_v11 }
 0x4cc   : > { %v4113_v19 = vadd.f32 %v1669_v17, %v1668_v6 }
 0x4ce   : > { %v1671_v31 = vpack.c.bf16 %v4113_v19, %v4113_v19 }
 0x4d0   : > { %1673 = vst [vmem:[#allocation11 + $0x8] sm:$0xf] %v1671_v31  ;;  %1707 = vmatmul.mubr.bf16.vlgmr.msra.gmra.mxu0 %v1671_v31  ;;  %2812 = vmatmul.mubr.bf16.vlgmr.msra.gmra.mxu1 %v1671_v31 }
 0x4d1   : > { %1790 = vmatpush1.bf16.msra.mxu0 %v3873_v13  ;;  %2816 = vmatpush3.bf16.msra.mxu1 %v3887_v9 }
 0x4d2   : > { %1791 = vmatprep.subr.bf16.mxu0 %v3877_v12  ;;  %2817 = vmatprep.subr.bf16.mxu1 %v3330_v62 }
 0x4d3   : > { %1821 = vmatprep.mubr.bf16.mxu0 %v3331_v8  ;;  %2831 = vmatprep.mubr.msk.bf16.mxu1 %vm3332_vm0, %v3330_v62 }
 0x4d5   : > { %1792 = vmatpush1.bf16.msra.mxu0 %v3883_v14  ;;  %2818 = vmatpush3.bf16.msra.mxu1 %v3899_v56 }
 0x4d6   : > { %1793 = vmatprep.subr.bf16.mxu0 %v3892_v60  ;;  %2819 = vmatprep.subr.bf16.mxu1 %v3330_v62 }
 0x4d9   : > { %1794 = vmatpush1.bf16.msra.mxu0 %v3905_v63  ;;  %2820 = vmatpush3.bf16.msra.mxu1 %v3921_v54 }
 0x4da   : > { %1795 = vmatprep.subr.bf16.mxu0 %v3912_v5  ;;  %2821 = vmatprep.subr.bf16.mxu1 %v3330_v62 }
 0x4dd   : > { %1796 = vmatpush1.bf16.msra.mxu0 %v3927_v4  ;;  %2822 = vmatpush3.bf16.msra.mxu1 %v3944_v50 }
 0x4de   : > { %1797 = vmatprep.subr.bf16.mxu0 %v3935_v3  ;;  %2823 = vmatprep.subr.bf16.mxu1 %v3330_v62 }
 0x4e1   : > { %1798 = vmatpush1.bf16.msra.mxu0 %v3950_v15  ;;  %2824 = vmatpush3.bf16.msra.mxu1 %v3961_v38 }
 0x4e2   : > { %1799 = vmatprep.subr.bf16.mxu0 %v3955_v51  ;;  %2825 = vmatprep.subr.bf16.mxu1 %v3330_v62 }
 0x4e5   : > { %1800 = vmatpush1.bf16.msra.mxu0 %v3967_v32  ;;  %2826 = vmatpush3.bf16.msra.mxu1 %v3977_v43 }
 0x4e6   : > { %1801 = vmatprep.subr.bf16.mxu0 %v3972_v35  ;;  %2827 = vmatprep.subr.bf16.mxu1 %v3330_v62 }
 0x4e9   : > { %1802 = vmatpush1.bf16.msra.mxu0 %v3983_v42  ;;  %2828 = vmatpush3.bf16.msra.mxu1 %v3993_v30 }
 0x4ea   : > { %1803 = vmatprep.subr.bf16.mxu0 %v3988_v36  ;;  %2829 = vmatprep.subr.bf16.mxu1 %v3330_v62 }
 0x4ed   : > { %1804 = vmatpush1.bf16.msra.mxu0 %v3999_v29  ;;  %2830 = vmatpush3.bf16.msra.mxu1 %v4005_v26 }
 0x4ee   : > { %1904 = vmatprep.subr.bf16.mxu0 %v3869_v18  ;;  %2835 = vmatprep.subr.bf16.mxu1 %v3330_v62 }
 0x590   : > { %v1708_v34 = vpop.f32.mrf.mxu0  ;;  %v1749_v39 = vpop.f32.mrf.mxu1 }
 0x591   : > { %v1764_v41 = vadd.f32 %v1761_v45, %v1708_v34  ;;  %v1778_v2 = vadd.f32 %v4453_v52, %v1749_v39 }
 0x592   : > { %v1710_v33 = vpop.f32.mrf.mxu0  ;;  %v2813_v40 = vpop.f32.mrf.mxu1 }
 0x593   : > { %v2572_v49 = vmul.f32 -1.442695, %v1764_v41  ;;  %v1771_v21 = vadd.f32 %v1762_v37, %v1710_v33 }
 0x594   : > { %v1712_v44 = vpop.f32.mrf.mxu0  ;;  %v1752_v28 = vpop.f32.mrf.mxu1 }
 0x595   : > { %3042 = vpow2.f32 %v2572_v49  ;;  %v2573_v23 = vmul.f32 -1.442695, %v1771_v21 }
 0x596   : > { %v1713_v25 = vpop.f32.mrf.mxu0  ;;  %v2814_v24 = vpop.f32.mrf.mxu1 }
 0x597   : > { %3044 = vpow2.f32 %v2573_v23 }
 0x5a2   : > { %v3043_v20 = vpop.eup %3042 }
 0x5a3   : > { %v1768_v16 = vadd.f32 1.0, %v3043_v20 }
 0x5a4   : > { %v3045_v61 = vpop.eup %3044 }
 0x5a5   : > { %3046 = vrcp.f32 %v1768_v16  ;;  %v1775_v59 = vadd.f32 1.0, %v3045_v61  ;;  %v4199_v61 = vld [vmem:[#allocation2 + $0x38] ss:$12 sps:$4 sm:$0xff]  }
 0x5a7   : > { %3048 = vrcp.f32 %v1775_v59  ;;  %v1875_v59 = vunpack.c.l.bf16 %v4199_v61 }
 0x5b2   : > { %v3047_v7 = vpop.eup %3046 }
 0x5b3   : > { %v1779_v55 = vmul.f32 %v3047_v7, %v1778_v2  ;;  %v1878_v2 = vadd.f32 %v1875_v59, %v4017_v58  ;;  %v1990_v59 = vunpack.c.h.bf16 %v4199_v61 }
 0x5b4   : > { %v3049_v11 = vpop.eup %3048 }
 0x5b5   : > { %v1780_v10 = vadd.f32 %v1779_v55, %v1763_v0  ;;  %v1782_v48 = vsub.f32 1.0, %v3049_v11  ;;  %v1784_v31 = vmul.f32 %v3049_v11, %v4113_v19  ;;  %v1871_v19 = vld [vmem:[#allocation2 + $0x30] sm:$0xff] }
 0x5b6   : > { %v1873_v47 = vunpack.c.l.bf16 %v1871_v19  ;;  %v1874_v46 = vunpack.c.h.bf16 %v1871_v19 }
 0x5b7   : > { %3050 = vtanh.f32 %v1780_v10 }
 0x5b8   : > { %v1876_v45 = vadd.f32 %v1873_v47, %v3930_v1  ;;  %v1877_v37 = vadd.f32 %v1874_v46, %v3938_v53 }
 0x5c4   : > { %v3051_v6 = vpop.eup %3050 }
 0x5c5   : > { %v1783_v17 = vmul.f32 %v3051_v6, %v1782_v48 }
 0x5c7   : > { %v4158_v27 = vadd.f32 %v1784_v31, %v1783_v17 }
 0x5c9   : > { %v1786_v22 = vpack.c.bf16 %v4158_v27, %v4158_v27 }
 0x5cb   : > { %1788 = vst [vmem:[#allocation11 + $0xc] sm:$0xf] %v1786_v22  ;;  %1822 = vmatmul.mubr.bf16.vlgmr.msra.gmra.mxu0 %v1786_v22  ;;  %2832 = vmatmul.mubr.bf16.vlgmr.msra.gmra.mxu1 %v1786_v22 }
 0x5cc   : > { %1905 = vmatpush1.bf16.msra.mxu0 %v3873_v13  ;;  %2836 = vmatpush3.bf16.msra.mxu1 %v3887_v9 }
 0x5cd   : > { %1906 = vmatprep.subr.bf16.mxu0 %v3877_v12  ;;  %2837 = vmatprep.subr.bf16.mxu1 %v3330_v62 }
 0x5ce   : > { %1936 = vmatprep.mubr.bf16.mxu0 %v3331_v8  ;;  %2851 = vmatprep.mubr.msk.bf16.mxu1 %vm3332_vm0, %v3330_v62 }
 0x5d0   : > { %1907 = vmatpush1.bf16.msra.mxu0 %v3883_v14  ;;  %2838 = vmatpush3.bf16.msra.mxu1 %v3899_v56 }
 0x5d1   : > { %1908 = vmatprep.subr.bf16.mxu0 %v3892_v60  ;;  %2839 = vmatprep.subr.bf16.mxu1 %v3330_v62 }
 0x5d4   : > { %1909 = vmatpush1.bf16.msra.mxu0 %v3905_v63  ;;  %2840 = vmatpush3.bf16.msra.mxu1 %v3921_v54 }
 0x5d5   : > { %1910 = vmatprep.subr.bf16.mxu0 %v3912_v5  ;;  %2841 = vmatprep.subr.bf16.mxu1 %v3330_v62 }
 0x5d8   : > { %1911 = vmatpush1.bf16.msra.mxu0 %v3927_v4  ;;  %2842 = vmatpush3.bf16.msra.mxu1 %v3944_v50 }
 0x5d9   : > { %1912 = vmatprep.subr.bf16.mxu0 %v3935_v3  ;;  %2843 = vmatprep.subr.bf16.mxu1 %v3330_v62 }
 0x5dc   : > { %1913 = vmatpush1.bf16.msra.mxu0 %v3950_v15  ;;  %2844 = vmatpush3.bf16.msra.mxu1 %v3961_v38 }
 0x5dd   : > { %1914 = vmatprep.subr.bf16.mxu0 %v3955_v51  ;;  %2845 = vmatprep.subr.bf16.mxu1 %v3330_v62 }
 0x5e0   : > { %1915 = vmatpush1.bf16.msra.mxu0 %v3967_v32  ;;  %2846 = vmatpush3.bf16.msra.mxu1 %v3977_v43 }
 0x5e1   : > { %1916 = vmatprep.subr.bf16.mxu0 %v3972_v35  ;;  %2847 = vmatprep.subr.bf16.mxu1 %v3330_v62 }
 0x5e4   : > { %1917 = vmatpush1.bf16.msra.mxu0 %v3983_v42  ;;  %2848 = vmatpush3.bf16.msra.mxu1 %v3993_v30 }
 0x5e5   : > { %1918 = vmatprep.subr.bf16.mxu0 %v3988_v36  ;;  %2849 = vmatprep.subr.bf16.mxu1 %v3330_v62 }
 0x5e8   : > { %1919 = vmatpush1.bf16.msra.mxu0 %v3999_v29  ;;  %2850 = vmatpush3.bf16.msra.mxu1 %v4005_v26 }
 0x5e9   : > { %2019 = vmatprep.subr.bf16.mxu0 %v3869_v18  ;;  %2855 = vmatprep.subr.bf16.mxu1 %v3330_v62 }
 0x68b   : > { %v1823_v34 = vpop.f32.mrf.mxu0  ;;  %v1864_v39 = vpop.f32.mrf.mxu1 }
 0x68c   : > { %v1879_v41 = vadd.f32 %v1876_v45, %v1823_v34  ;;  %v1893_v7 = vadd.f32 %v4453_v52, %v1864_v39 }
 0x68d   : > { %v1825_v33 = vpop.f32.mrf.mxu0  ;;  %v2833_v40 = vpop.f32.mrf.mxu1 }
 0x68e   : > { %v2574_v49 = vmul.f32 -1.442695, %v1879_v41  ;;  %v1886_v21 = vadd.f32 %v1877_v37, %v1825_v33 }
 0x68f   : > { %v1827_v44 = vpop.f32.mrf.mxu0  ;;  %v1867_v28 = vpop.f32.mrf.mxu1 }
 0x690   : > { %3052 = vpow2.f32 %v2574_v49  ;;  %v2575_v23 = vmul.f32 -1.442695, %v1886_v21 }
 0x691   : > { %v1828_v25 = vpop.f32.mrf.mxu0  ;;  %v2834_v24 = vpop.f32.mrf.mxu1 }
 0x692   : > { %3054 = vpow2.f32 %v2575_v23 }
 0x69d   : > { %v3053_v20 = vpop.eup %3052 }
 0x69e   : > { %v1883_v16 = vadd.f32 1.0, %v3053_v20 }
 0x69f   : > { %v3055_v57 = vpop.eup %3054 }
 0x6a0   : > { %3056 = vrcp.f32 %v1883_v16  ;;  %v1890_v0 = vadd.f32 1.0, %v3055_v57 }
 0x6a2   : > { %3058 = vrcp.f32 %v1890_v0 }
 0x6ad   : > { %v3057_v55 = vpop.eup %3056 }
 0x6ae   : > { %v1894_v10 = vmul.f32 %v3057_v55, %v1893_v7 }
 0x6af   : > { %v3059_v48 = vpop.eup %3058 }
 0x6b0   : > { %v1895_v11 = vadd.f32 %v1894_v10, %v1878_v2  ;;  %v1897_v6 = vsub.f32 1.0, %v3059_v48  ;;  %v1899_v22 = vmul.f32 %v3059_v48, %v4158_v27  ;;  %v1986_v27 = vld [vmem:[#allocation2 + $0x3c] sm:$0xff]  ;;  %v1993_v2 = vadd.f32 %v1990_v59, %v4017_v58 }
 0x6b1   : > { %v1988_v45 = vunpack.c.l.bf16 %v1986_v27  ;;  %v1989_v34 = vunpack.c.h.bf16 %v1986_v27 }
 0x6b2   : > { %3060 = vtanh.f32 %v1895_v11 }
 0x6b3   : > { %v1991_v46 = vadd.f32 %v1988_v45, %v3930_v1  ;;  %v1992_v44 = vadd.f32 %v1989_v34, %v3938_v53 }
 0x6bf   : > { %v3061_v17 = vpop.eup %3060 }
 0x6c0   : > { %v1898_v31 = vmul.f32 %v3061_v17, %v1897_v6 }
 0x6c2   : > { %v4205_v19 = vadd.f32 %v1899_v22, %v1898_v31 }
 0x6c4   : > { %v1901_v47 = vpack.c.bf16 %v4205_v19, %v4205_v19 }
 0x6c6   : > { %1903 = vst [vmem:[#allocation11 + $0x10] sm:$0xf] %v1901_v47  ;;  %1937 = vmatmul.mubr.bf16.vlgmr.msra.gmra.mxu0 %v1901_v47  ;;  %2852 = vmatmul.mubr.bf16.vlgmr.msra.gmra.mxu1 %v1901_v47 }
 0x6c7   : > { %2020 = vmatpush1.bf16.msra.mxu0 %v3873_v13  ;;  %2856 = vmatpush3.bf16.msra.mxu1 %v3887_v9 }
 0x6c8   : > { %2021 = vmatprep.subr.bf16.mxu0 %v3877_v12  ;;  %2857 = vmatprep.subr.bf16.mxu1 %v3330_v62 }
 0x6c9   : > { %2051 = vmatprep.mubr.bf16.mxu0 %v3331_v8  ;;  %2871 = vmatprep.mubr.msk.bf16.mxu1 %vm3332_vm0, %v3330_v62 }
 0x6cb   : > { %2022 = vmatpush1.bf16.msra.mxu0 %v3883_v14  ;;  %2858 = vmatpush3.bf16.msra.mxu1 %v3899_v56 }
 0x6cc   : > { %2023 = vmatprep.subr.bf16.mxu0 %v3892_v60  ;;  %2859 = vmatprep.subr.bf16.mxu1 %v3330_v62 }
 0x6cf   : > { %2024 = vmatpush1.bf16.msra.mxu0 %v3905_v63  ;;  %2860 = vmatpush3.bf16.msra.mxu1 %v3921_v54 }
 0x6d0   : > { %2025 = vmatprep.subr.bf16.mxu0 %v3912_v5  ;;  %2861 = vmatprep.subr.bf16.mxu1 %v3330_v62 }
 0x6d3   : > { %2026 = vmatpush1.bf16.msra.mxu0 %v3927_v4  ;;  %2862 = vmatpush3.bf16.msra.mxu1 %v3944_v50 }
 0x6d4   : > { %2027 = vmatprep.subr.bf16.mxu0 %v3935_v3  ;;  %2863 = vmatprep.subr.bf16.mxu1 %v3330_v62 }
 0x6d7   : > { %2028 = vmatpush1.bf16.msra.mxu0 %v3950_v15  ;;  %2864 = vmatpush3.bf16.msra.mxu1 %v3961_v38 }
 0x6d8   : > { %2029 = vmatprep.subr.bf16.mxu0 %v3955_v51  ;;  %2865 = vmatprep.subr.bf16.mxu1 %v3330_v62 }
 0x6db   : > { %2030 = vmatpush1.bf16.msra.mxu0 %v3967_v32  ;;  %2866 = vmatpush3.bf16.msra.mxu1 %v3977_v43 }
 0x6dc   : > { %2031 = vmatprep.subr.bf16.mxu0 %v3972_v35  ;;  %2867 = vmatprep.subr.bf16.mxu1 %v3330_v62 }
 0x6df   : > { %2032 = vmatpush1.bf16.msra.mxu0 %v3983_v42  ;;  %2868 = vmatpush3.bf16.msra.mxu1 %v3993_v30 }
 0x6e0   : > { %2033 = vmatprep.subr.bf16.mxu0 %v3988_v36  ;;  %2869 = vmatprep.subr.bf16.mxu1 %v3330_v62 }
 0x6e3   : > { %2034 = vmatpush1.bf16.msra.mxu0 %v3999_v29  ;;  %2870 = vmatpush3.bf16.msra.mxu1 %v4005_v26 }
 0x6e4   : > { %2134 = vmatprep.subr.bf16.mxu0 %v3869_v18  ;;  %2875 = vmatprep.subr.bf16.mxu1 %v3330_v62 }
 0x786   : > { %v1938_v39 = vpop.f32.mrf.mxu0  ;;  %v1979_v41 = vpop.f32.mrf.mxu1 }
 0x787   : > { %v1994_v33 = vadd.f32 %v1991_v46, %v1938_v39  ;;  %v2008_v7 = vadd.f32 %v4453_v52, %v1979_v41 }
 0x788   : > { %v1940_v40 = vpop.f32.mrf.mxu0  ;;  %v2853_v49 = vpop.f32.mrf.mxu1 }
 0x789   : > { %v2576_v37 = vmul.f32 -1.442695, %v1994_v33  ;;  %v2001_v21 = vadd.f32 %v1992_v44, %v1940_v40 }
 0x78a   : > { %v1942_v28 = vpop.f32.mrf.mxu0  ;;  %v1982_v25 = vpop.f32.mrf.mxu1 }
 0x78b   : > { %3062 = vpow2.f32 %v2576_v37  ;;  %v2577_v23 = vmul.f32 -1.442695, %v2001_v21  ;;  %v2216_v37 = vld [vmem:[#allocation2 + $0x54] sm:$0xff] }
 0x78c   : > { %v1943_v24 = vpop.f32.mrf.mxu0  ;;  %v2854_v18 = vpop.f32.mrf.mxu1  ;;  %v2218_v44 = vunpack.c.l.bf16 %v2216_v37  ;;  %v2219_v25 = vunpack.c.h.bf16 %v2216_v37 }
 0x78d   : > { %3064 = vpow2.f32 %v2577_v23 }
 0x78e   : > { %v2221_v28 = vadd.f32 %v2218_v44, %v3930_v1 }
 0x798   : > { %v3063_v20 = vpop.eup %3062 }
 0x799   : > { %v1998_v16 = vadd.f32 1.0, %v3063_v20 }
 0x79a   : > { %v3065_v57 = vpop.eup %3064 }
 0x79b   : > { %3066 = vrcp.f32 %v1998_v16  ;;  %v2005_v0 = vadd.f32 1.0, %v3065_v57  ;;  %v2222_v57 = vadd.f32 %v2219_v25, %v3938_v53 }
 0x79d   : > { %3068 = vrcp.f32 %v2005_v0 }
 0x7a8   : > { %v3067_v55 = vpop.eup %3066 }
 0x7a9   : > { %v2009_v10 = vmul.f32 %v3067_v55, %v2008_v7 }
 0x7aa   : > { %v3069_v48 = vpop.eup %3068 }
 0x7ab   : > { %v2010_v11 = vadd.f32 %v2009_v10, %v1993_v2  ;;  %v2012_v6 = vsub.f32 1.0, %v3069_v48  ;;  %v2014_v22 = vmul.f32 %v3069_v48, %v4205_v19 }
 0x7ad   : > { %3070 = vtanh.f32 %v2010_v11 }
 0x7ba   : > { %v3071_v17 = vpop.eup %3070 }
 0x7bb   : > { %v2013_v31 = vmul.f32 %v3071_v17, %v2012_v6 }
 0x7bd   : > { %v4250_v47 = vadd.f32 %v2014_v22, %v2013_v31 }
 0x7bf   : > { %v2016_v61 = vpack.c.bf16 %v4250_v47, %v4250_v47 }
 0x7c1   : > { %2018 = vst [vmem:[#allocation11 + $0x14] sm:$0xf] %v2016_v61  ;;  %2052 = vmatmul.mubr.bf16.vlgmr.msra.gmra.mxu0 %v2016_v61  ;;  %2872 = vmatmul.mubr.bf16.vlgmr.msra.gmra.mxu1 %v2016_v61 }
 0x7c2   : > { %2135 = vmatpush1.bf16.msra.mxu0 %v3873_v13  ;;  %2876 = vmatpush3.bf16.msra.mxu1 %v3887_v9  ;;  %v2101_v13 = vld [vmem:[#allocation2 + $0x48] sm:$0xff] }
 0x7c3   : > { %2136 = vmatprep.subr.bf16.mxu0 %v3877_v12  ;;  %2877 = vmatprep.subr.bf16.mxu1 %v3330_v62  ;;  %v2103_v12 = vunpack.c.l.bf16 %v2101_v13  ;;  %v2104_v9 = vunpack.c.h.bf16 %v2101_v13 }
 0x7c4   : > { %2166 = vmatprep.mubr.bf16.mxu0 %v3331_v8  ;;  %2891 = vmatprep.mubr.msk.bf16.mxu1 %vm3332_vm0, %v3330_v62 }
 0x7c6   : > { %2137 = vmatpush1.bf16.msra.mxu0 %v3883_v14  ;;  %2878 = vmatpush3.bf16.msra.mxu1 %v3899_v56  ;;  %v2106_v14 = vadd.f32 %v2103_v12, %v3930_v1 }
 0x7c7   : > { %2138 = vmatprep.subr.bf16.mxu0 %v3892_v60  ;;  %2879 = vmatprep.subr.bf16.mxu1 %v3330_v62 }
 0x7ca   : > { %2139 = vmatpush1.bf16.msra.mxu0 %v3905_v63  ;;  %2880 = vmatpush3.bf16.msra.mxu1 %v3921_v54 }
 0x7cb   : > { %2140 = vmatprep.subr.bf16.mxu0 %v3912_v5  ;;  %2881 = vmatprep.subr.bf16.mxu1 %v3330_v62 }
 0x7ce   : > { %2141 = vmatpush1.bf16.msra.mxu0 %v3927_v4  ;;  %2882 = vmatpush3.bf16.msra.mxu1 %v3944_v50  ;;  %v2107_v4 = vadd.f32 %v2104_v9, %v3938_v53 }
 0x7cf   : > { %2142 = vmatprep.subr.bf16.mxu0 %v3935_v3  ;;  %2883 = vmatprep.subr.bf16.mxu1 %v3330_v62 }
 0x7d2   : > { %2143 = vmatpush1.bf16.msra.mxu0 %v3950_v15  ;;  %2884 = vmatpush3.bf16.msra.mxu1 %v3961_v38 }
 0x7d3   : > { %2144 = vmatprep.subr.bf16.mxu0 %v3955_v51  ;;  %2885 = vmatprep.subr.bf16.mxu1 %v3330_v62 }
 0x7d6   : > { %2145 = vmatpush1.bf16.msra.mxu0 %v3967_v32  ;;  %2886 = vmatpush3.bf16.msra.mxu1 %v3977_v43  ;;  %v2102_v43 = vld [vmem:[#allocation2 + $0x50] ss:$12 sps:$4 sm:$0xff]  }
 0x7d7   : > { %2146 = vmatprep.subr.bf16.mxu0 %v3972_v35  ;;  %2887 = vmatprep.subr.bf16.mxu1 %v3330_v62  ;;  %v2220_v6 = vunpack.c.h.bf16 %v2102_v43 }
 0x7d9   : > { %v2223_v31 = vadd.f32 %v2220_v6, %v4017_v58 }
 0x7da   : > { %2147 = vmatpush1.bf16.msra.mxu0 %v3983_v42  ;;  %2888 = vmatpush3.bf16.msra.mxu1 %v3993_v30 }
 0x7db   : > { %2148 = vmatprep.subr.bf16.mxu0 %v3988_v36  ;;  %2889 = vmatprep.subr.bf16.mxu1 %v3330_v62  ;;  %v2105_v36 = vunpack.c.l.bf16 %v2102_v43 }
 0x7de   : > { %2149 = vmatpush1.bf16.msra.mxu0 %v3999_v29  ;;  %2890 = vmatpush3.bf16.msra.mxu1 %v4005_v26  ;;  %v2108_v29 = vadd.f32 %v2105_v36, %v4017_v58 }
 0x881   : > { %v2053_v60 = vpop.f32.mrf.mxu0  ;;  %v2094_v8 = vpop.f32.mrf.mxu1 }
 0x882   : > { %v2109_v56 = vadd.f32 %v2106_v14, %v2053_v60  ;;  %v2123_v26 = vadd.f32 %v4453_v52, %v2094_v8 }
 0x883   : > { %v2055_v63 = vpop.f32.mrf.mxu0  ;;  %v2873_v5 = vpop.f32.mrf.mxu1 }
 0x884   : > { %v2578_v54 = vmul.f32 -1.442695, %v2109_v56  ;;  %v2116_v51 = vadd.f32 %v2107_v4, %v2055_v63 }
 0x885   : > { %v2057_v3 = vpop.f32.mrf.mxu0  ;;  %v2097_v50 = vpop.f32.mrf.mxu1 }
 0x886   : > { %3072 = vpow2.f32 %v2578_v54  ;;  %v2579_v38 = vmul.f32 -1.442695, %v2116_v51 }
 0x887   : > { %v2058_v62 = vpop.f32.mrf.mxu0  ;;  %v2874_v15 = vpop.f32.mrf.mxu1 }
 0x888   : > { %3074 = vpow2.f32 %v2579_v38 }
 0x893   : > { %v3073_v32 = vpop.eup %3072 }
 0x894   : > { %v2113_v35 = vadd.f32 1.0, %v3073_v32 }
 0x895   : > { %v3075_v42 = vpop.eup %3074 }
 0x896   : > { %3076 = vrcp.f32 %v2113_v35  ;;  %v2120_v30 = vadd.f32 1.0, %v3075_v42 }
 0x898   : > { %3078 = vrcp.f32 %v2120_v30 }
 0x8a3   : > { %v3077_v19 = vpop.eup %3076 }
 0x8a4   : > { %v2124_v27 = vmul.f32 %v3077_v19, %v2123_v26 }
 0x8a5   : > { %v3079_v46 = vpop.eup %3078 }
 0x8a6   : > { %v2125_v45 = vadd.f32 %v2124_v27, %v2108_v29  ;;  %v2127_v34 = vsub.f32 1.0, %v3079_v46  ;;  %v2129_v33 = vmul.f32 %v3079_v46, %v4250_v47 }
 0x8a8   : > { %3080 = vtanh.f32 %v2125_v45 }
 0x8b5   : > { %v3081_v39 = vpop.eup %3080 }
 0x8b6   : > { %v2128_v41 = vmul.f32 %v3081_v39, %v2127_v34 }
 0x8b8   : > { %v2130_v40 = vadd.f32 %v2129_v33, %v2128_v41 }
 0x8ba   : > { %v2131_v49 = vpack.c.bf16 %v2130_v40, %v2130_v40 }
 0x8bc   : > { %2133 = vst [vmem:[#allocation11 + $0x18] sm:$0xf] %v2131_v49  ;;  %2167 = vmatmul.mubr.bf16.vlgmr.msra.gmra.mxu0 %v2131_v49  ;;  %2892 = vmatmul.mubr.bf16.vlgmr.msra.gmra.mxu1 %v2131_v49 }
 0x97c   : > { %v2168_v24 = vpop.f32.mrf.mxu0  ;;  %v2209_v18 = vpop.f32.mrf.mxu1 }
 0x97d   : > { %v2224_v21 = vadd.f32 %v2221_v28, %v2168_v24  ;;  %v2238_v53 = vadd.f32 %v4453_v52, %v2209_v18 }
 0x97e   : > { %v2170_v23 = vpop.f32.mrf.mxu0  ;;  %v2893_v20 = vpop.f32.mrf.mxu1 }
 0x97f   : > { %v2580_v16 = vmul.f32 -1.442695, %v2224_v21  ;;  %v2231_v55 = vadd.f32 %v2222_v57, %v2170_v23 }
 0x980   : > { %v2172_v59 = vpop.f32.mrf.mxu0  ;;  %v2212_v0 = vpop.f32.mrf.mxu1 }
 0x981   : > { %3082 = vpow2.f32 %v2580_v16  ;;  %v2581_v10 = vmul.f32 -1.442695, %v2231_v55 }
 0x982   : > { %v2173_v2 = vpop.f32.mrf.mxu0  ;;  %v2894_v7 = vpop.f32.mrf.mxu1 }
 0x983   : > { %3084 = vpow2.f32 %v2581_v10 }
 0x98e   : > { %v3083_v11 = vpop.eup %3082 }
 0x98f   : > { %v2228_v1 = vadd.f32 1.0, %v3083_v11 }
 0x990   : > { %v3085_v48 = vpop.eup %3084 }
 0x991   : > { %3086 = vrcp.f32 %v2228_v1  ;;  %v2235_v17 = vadd.f32 1.0, %v3085_v48 }
 0x993   : > { %3088 = vrcp.f32 %v2235_v17 }
 0x99e   : > { %v3087_v22 = vpop.eup %3086 }
 0x99f   : > { %v2239_v47 = vmul.f32 %v3087_v22, %v2238_v53 }
 0x9a0   : > { %v3089_v13 = vpop.eup %3088 }
 0x9a1   : > { %v2240_v61 = vadd.f32 %v2239_v47, %v2223_v31  ;;  %v2242_v12 = vsub.f32 1.0, %v3089_v13  ;;  %v2244_v60 = vmul.f32 %v3089_v13, %v2130_v40 }
 0x9a3   : > { %3090 = vtanh.f32 %v2240_v61 }
 0x9b0   : > { %v3091_v14 = vpop.eup %3090 }
 0x9b1   : > { %v2243_v9 = vmul.f32 %v3091_v14, %v2242_v12 }
 0x9b3   : > { %v2245_v58 = vadd.f32 %v2244_v60, %v2243_v9 }
 0x9b5   : > { %v2246_v52 = vpack.c.bf16 %v2245_v58, %v2245_v58  ;;  %2249 = vst [vmem:[%s3767_s2] sm:$0xff] %v2245_v58 }
 0x9b6   : > { %3215 = shalt.err (!%p3212_p8)
}
 0x9b7   : > { %s3216_s18 = scalar_lea.hbm %s4301_s26, 128  ;;  %s3220_s10 = scalar_lea.hbm %s4374_s6, 256 }
 0x9b8   : > { %p3217_p6 = scmp.ne.s32.totalorder %s4301_s26, %s3216_s18  ;;  %p3221_p7 = scmp.lt.s32.totalorder %s4301_s26, %s4374_s6 }
 0x9b9   : > { %p3222_p5 = scmp.lt.s32.totalorder %s3220_s10, %s3216_s18 }
 0x9ba   : > { %p3218_p13 = pnand %p3217_p6, %p3469_p12 }
 0x9bb   : > { %p3223_p11 = por %p3222_p5, %p3221_p7 }
 0x9bc   : > { %p3219_p0 = pneg %p3218_p13 }
 0x9be   : > { %p3224_p2 = pnand %p3223_p11, %p3219_p0 }
 0x9c0   : > { %3227 = shalt.err (!%p3224_p2)
}
 0x9c1   : > { %2915 = dma.vmem_to_hbm [thread:$0]  (%p3469_p12), %s4303_s28, 128, %s4301_s26, %s2251_s24   ;;  %2248 = vst [vmem:[#allocation11 + $0x1c] sm:$0xf] %v2246_v52 }
 0x9c2   : > { %s3228_s8 = scalar_lea.vmem %s4305_s9, 512  ;;  %p4454_p1 = scmp.eq.s32.totalorder %s3450_s11, 1 }
 0x9c3   : > { %p3229_p3 = scmp.ne.s32.totalorder %s4305_s9, %s3228_s8  ;;  %p3235_p10 = scmp.lt.s32.totalorder %s4305_s9, %s4305_s9 }
 0x9c4   : > { %p3236_p8 = scmp.lt.s32.totalorder %s3228_s8, %s3228_s8 }
 0x9c5   : > { %p3230_p4 = pnand %p3229_p3, %p4454_p1 }
 0x9c6   : > { %p3237_p6 = por %p3236_p8, %p3235_p10 }
 0x9c7   : > { %p3231_p9 = pneg %p3230_p4 }
 0x9c9   : > { %p3238_p13 = pnand %p3237_p6, %p3231_p9 }
 0x9cb   : > { %3241 = shalt.err (!%p3238_p13)
}
 0x9cc   : > { %s3335_s13 = smov 64   ;;  %s3336_s19 = smov 4  }
 0x9cd   : > { %p4455_p0 = pmov %p4454_p1 }
 0x9cf   : > { %2914 = dma.vmem_to_hbm [thread:$0]  (%p4455_p0), %s4305_s9, 512, %s4373_s5, [#allocation5], %s3335_s13, %s3335_s13, %s3336_s19  }
 0x9d0   : > { %p4456_p12 = pmov %p4455_p0 }
 0x9d1   : > { %p4457_p7 = pmov %p4455_p0 }
 0x9d2   : > { %3289 = dma.done.wait (%p4456_p12), [#allocation5], 512  }
 0x9d3   : > { %3291 = vsyncadd (%p4457_p7), [#allocation5], 4294966784 }
 0x9d4 PF: > { %s4458_s28 = sld [smem:[#allocation20_spill]]  ;;  %s2296_s12 = sand.u32 1, %s3298_s21  }
 0x9d5   : > { %p4459_p5 = scmp.ne.s32.totalorder %s4404_s16, 0  ;;  %s2297_s27 = scalar_lea.sflag [#allocation13], %s2296_s12 }
 0x9da   : > { %p4460_p11 = scmp.ge.s32.totalorder %s4458_s28, 2 }
 0x9dc   : > { %p2934_p2 = pnand %p4460_p11, %p4459_p5 }
 0x9de   : > { %p2935_p3 = pneg %p2934_p2 }
 0x9e0   : > { %3293 = dma.done.wait (%p2935_p3), %s2297_s27, 128  }
 0x9e1   : > { %3295 = vsyncadd (%p2935_p3), %s2297_s27, 4294967168  ;;  %s28_s26 = sadd.s32 1, %s4458_s28   ;;  %s4461_s9 = sld [smem:[#allocation19_spill]] }
 0x9e2   : > { %p25_p1 = scmp.ge.s32.totalorder %s28_s26, 4   ;;  %s4462_s23 = sld [smem:[#allocation22_spill]] }
 0x9e3   : > { %s4463_s11 = sld [smem:[#allocation21_spill]]  ;;  %s4464_s21 = smov %s3302_s22 }
 0x9e4   : > { %s4466_s24 = smov %s3314_s25 }
 0x9e5   :  { %27 = sbr.rel (!%p25_p1) target bundleno = 14 (0xe), region = 150 }
 0x9e7   : > { %s4465_s22 = smov %s4461_s9 }
 0x9e9   : > { %s4467_s25 = smov %s4463_s11 }
 0x9ea   :  { %2302 = vsyncpa [#allocation4], 1 }
 0x9eb   :  { %2304 = vsyncpa [#allocation4 + $0x1], 1 }
 0x9ec   :  { %2305 = vsyncpa [#allocation7], 1 }
 0x9ed   :  { %2307 = vsyncpa [#allocation7 + $0x1], 1 }
 0x9ee   :  { %2308 = vsyncpa [#allocation10], 1 }
 0x9ef   :  { %2310 = vsyncpa [#allocation10 + $0x1], 1 }
 0x9f0   :  { %2311 = vsyncpa [#allocation5], 1 }
 0x9f1   :  { %2313 = vsyncpa [#allocation5 + $0x1], 1 }
 0x9f2   :  { %2314 = vsyncpa [#allocation13], 1 }
 0x9f3   :  { %2316 = vsyncpa [#allocation13 + $0x1], 1 }

</bundles_post_ra>
